<compile_context>
chip_gen: v7x
topology: tpu7x:2x2x1
jax: 0.10.0
libtpu: 0.0.40
codegen_flags: <defaults>
</compile_context>

<pallas_src>
import jax
import jax.numpy as jnp
from jax import lax
from jax.experimental import pallas as pl
from jax.experimental.pallas import tpu as pltpu

# ---- model hyper-parameters (small synthetic config) -------------------------
NUM_LAYERS = 2
HIDDEN = 32
VOCAB = 16          # len(tokens.int_to_chars)
BATCH = 2
SEQ = 8
DROP_PROB = 0.3     # unused at inference (dropout == identity)

_VMEM = pl.BlockSpec(memory_space=pltpu.MemorySpace.VMEM)


# ---------------------------------------------------------------------------
# Fused Pallas kernel: [LSTM layer0 || LSTM layer1 wavefront -> FC] in one launch
# ---------------------------------------------------------------------------
def _make_fused_kernel(seq: int, hidden: int):
    H = hidden
    S = seq

    def kernel(x_tm_ref, h0_ref, c0_ref,
               wih0_ref, bias0_ref, recw_ref, bias1_ref,
               fcw_ref, fcb_ref,
               out_ref, hn_ref, cn_ref,
               hid_ref):
        f32 = jnp.float32
        B = h0_ref.shape[1]

        # ---- loop-invariant loads (exactly once) ----------------------------
        recw = recw_ref[...]              # (3H,4H) = [Whh0^T; Whh1^T; Wih1^T], g-cols pre-scaled x2
        whh0 = recw[0:H, :]               # (H, 4H)
        recw_l1 = recw[H:3 * H, :]        # (2H,4H) = [Whh1^T; Wih1^T]
        bias1 = bias1_ref[...]            # (1, 4H)
        zBH = jnp.zeros((B, H), f32)

        # ---- hoisted layer-0 input projection for the whole sequence --------
        # rows are time-major (s*B + b): step t uses a contiguous sublane slice.
        gates_in0 = (jnp.dot(x_tm_ref[...], wih0_ref[...],
                             preferred_element_type=f32)
                     + bias0_ref[...])    # (S*B, 4H)

        def act(gates):
            # gates: (rows, 4H); g-gate columns are pre-scaled by 2, so
            # tanh(a_g) == 2*sigmoid(2*a_g) - 1 comes out of the single
            # full-width sigmoid pass (one EUP push instead of sigmoid+tanh).
            sig = jax.nn.sigmoid(gates)
            i_g = sig[:, 0 * H:1 * H]
            f_g = sig[:, 1 * H:2 * H]
            g_g = 2.0 * sig[:, 2 * H:3 * H] - 1.0
            o_g = sig[:, 3 * H:4 * H]
            return i_g, f_g, g_g, o_g

        h_l0 = h0_ref[0]
        c_l0 = c0_ref[0]
        h_l1 = h0_ref[1]
        c_l1 = c0_ref[1]

        # ---- wavefront prologue (w = 0): layer 0 only, time step 0 ----------
        g0 = gates_in0[0:B, :] + jnp.dot(h_l0, whh0, preferred_element_type=f32)
        i_g, f_g, g_g, o_g = act(g0)
        c_l0 = f_g * c_l0 + i_g * g_g
        h_l0 = o_g * jnp.tanh(c_l0)

        # ---- interior wavefront steps (w = 1 .. S-1), static unroll ---------
        for w in range(1, S):
            # One block-diagonal MXU push covers: layer-0 recurrence (time w),
            # layer-1 recurrence (time w-1), layer-1 input projection of h_l0
            # (= layer-0 output at time w-1).
            lhs = jnp.concatenate([
                jnp.concatenate([h_l0, zBH, zBH], axis=1),
                jnp.concatenate([zBH, h_l1, zBH], axis=1),
                jnp.concatenate([zBH, zBH, h_l0], axis=1),
            ], axis=0)                                             # (3B, 3H)
            res = jnp.dot(lhs, recw, preferred_element_type=f32)   # (3B, 4H)

            g_l0 = gates_in0[w * B:(w + 1) * B, :] + res[0:B, :]
            g_l1 = res[B:2 * B, :] + res[2 * B:3 * B, :] + bias1
            gates = jnp.concatenate([g_l0, g_l1], axis=0)          # (2B, 4H)

            i_g, f_g, g_g, o_g = act(gates)
            c_prev = jnp.concatenate([c_l0, c_l1], axis=0)         # (2B, H)
            c_new = f_g * c_prev + i_g * g_g
            h_new = o_g * jnp.tanh(c_new)

            h_l0, h_l1 = h_new[0:B, :], h_new[B:2 * B, :]
            c_l0, c_l1 = c_new[0:B, :], c_new[B:2 * B, :]

            # layer-1 output for time w-1 -> time-major scratch slab
            hid_ref[(w - 1) * B:w * B, :] = h_l1

        # ---- wavefront epilogue (w = S): layer 1 only, time step S-1 --------
        lhs = jnp.concatenate([
            jnp.concatenate([h_l1, zBH], axis=1),
            jnp.concatenate([zBH, h_l0], axis=1),
        ], axis=0)                                                 # (2B, 2H)
        res = jnp.dot(lhs, recw_l1, preferred_element_type=f32)    # (2B, 4H)
        g_l1 = res[0:B, :] + res[B:2 * B, :] + bias1
        i_g, f_g, g_g, o_g = act(g_l1)
        c_l1 = f_g * c_l1 + i_g * g_g
        h_l1 = o_g * jnp.tanh(c_l1)
        hid_ref[(S - 1) * B:S * B, :] = h_l1

        # ---- final states ----------------------------------------------------
        hn_ref[0] = h_l0
        hn_ref[1] = h_l1
        cn_ref[0] = c_l0
        cn_ref[1] = c_l1

        # ---- final FC on the time-major hidden slab (dropout == identity) ---
        out_ref[...] = (jnp.dot(hid_ref[...], fcw_ref[...],
                                preferred_element_type=f32)
                        + fcb_ref[...])

    return kernel


# ---------------------------------------------------------------------------
# One-time parameter prep (outside the jitted forward)
# ---------------------------------------------------------------------------
def prepare_params(params):
    """Transpose weights, combine biases, stack recurrent weights, and
    pre-scale the g-gate columns by 2 (for the tanh == 2*sigmoid(2x)-1 trick).
    Done ONCE so the jitted inference path contains no per-call transposes."""
    assert len(params["lstm"]) == 2, "fused wavefront kernel is specialized to 2 layers"
    H = params["lstm"][0]["w_hh"].shape[1]
    g_scale = jnp.concatenate([jnp.ones((2 * H,), jnp.float32),
                               2.0 * jnp.ones((H,), jnp.float32),
                               jnp.ones((H,), jnp.float32)])[None, :]   # (1, 4H)

    l0, l1 = params["lstm"][0], params["lstm"][1]
    wih0_t = jnp.transpose(l0["w_ih"]) * g_scale                        # (V, 4H)
    bias0 = (l0["b_ih"] + l0["b_hh"]).reshape(1, -1) * g_scale          # (1, 4H)
    whh0_t = jnp.transpose(l0["w_hh"]) * g_scale                        # (H, 4H)
    whh1_t = jnp.transpose(l1["w_hh"]) * g_scale                        # (H, 4H)
    wih1_t = jnp.transpose(l1["w_ih"]) * g_scale                        # (H, 4H)
    bias1 = (l1["b_ih"] + l1["b_hh"]).reshape(1, -1) * g_scale          # (1, 4H)

    return {
        "wih0_t": wih0_t,
        "bias0": bias0,
        "rec_w": jnp.concatenate([whh0_t, whh1_t, wih1_t], axis=0),     # (3H, 4H)
        "bias1": bias1,
        "fc_w_t": jnp.transpose(params["fc_w"]),                        # (H, V)
        "fc_b": params["fc_b"].reshape(1, -1),                          # (1, V)
    }


# ---------------------------------------------------------------------------
# Forward wrapper (matches LSTMModel.forward(x, h, c))
# ---------------------------------------------------------------------------
def lstm_model_forward(prepared, x, h, c):
    """x: (batch, seq, vocab); h, c: (num_layers, batch, hidden)
    returns (output (batch*seq, vocab), hn, cn)"""
    B, S, Vin = x.shape
    L, _, H = h.shape
    V = prepared["fc_w_t"].shape[-1]
    assert L == 2, "fused wavefront kernel is specialized to num_layers == 2"

    # One tiny layout permutation outside the kernel: time-major rows s*B+b so
    # every per-step slice inside the kernel is a contiguous sublane slice.
    x_tm = jnp.transpose(x, (1, 0, 2)).reshape(S * B, Vin)

    kernel = _make_fused_kernel(S, H)
    out_tm, hn, cn = pl.pallas_call(
        kernel,
        out_shape=(
            jax.ShapeDtypeStruct((S * B, V), jnp.float32),
            jax.ShapeDtypeStruct((L, B, H), jnp.float32),
            jax.ShapeDtypeStruct((L, B, H), jnp.float32),
        ),
        in_specs=[_VMEM] * 9,
        out_specs=(_VMEM, _VMEM, _VMEM),
        scratch_shapes=[pltpu.VMEM((S * B, H), jnp.float32)],
    )(x_tm, h, c,
      prepared["wih0_t"], prepared["bias0"],
      prepared["rec_w"], prepared["bias1"],
      prepared["fc_w_t"], prepared["fc_b"])

    # Single row permutation back to PyTorch's contiguous().view(-1, H) order
    # (row = b*S + s).  1 KiB, fuses under jit.
    out = jnp.transpose(out_tm.reshape(S, B, V), (1, 0, 2)).reshape(B * S, V)
    return out, hn, cn


# ---------------------------------------------------------------------------
# Pure-JAX reference (for correctness check)
# ---------------------------------------------------------------------------
def _ref_forward(params, x, h, c):
    x_tm = jnp.transpose(x, (1, 0, 2))
    hn_list, cn_list = [], []
    layer_in = x_tm
    for l in range(NUM_LAYERS):
        p = params["lstm"][l]

        def step(carry, x_t, p=p):
            hh, cc = carry
            gates = x_t @ p["w_ih"].T + p["b_ih"] + hh @ p["w_hh"].T + p["b_hh"]
            i, f, g, o = jnp.split(gates, 4, axis=-1)
            i, f, o = jax.nn.sigmoid(i), jax.nn.sigmoid(f), jax.nn.sigmoid(o)
            g = jnp.tanh(g)
            cc = f * cc + i * g
            hh = o * jnp.tanh(cc)
            return (hh, cc), hh

        (hn, cn), ys = lax.scan(step, (h[l], c[l]), layer_in)
        hn_list.append(hn)
        cn_list.append(cn)
        layer_in = ys
    y_bf = jnp.transpose(layer_in, (1, 0, 2))
    out = y_bf.reshape(-1, HIDDEN) @ params["fc_w"].T + params["fc_b"]
    return out, jnp.stack(hn_list), jnp.stack(cn_list)


# ---------------------------------------------------------------------------
def init_params(key):
    params = {"lstm": []}
    scale = 1.0 / jnp.sqrt(HIDDEN)
    for l in range(NUM_LAYERS):
        in_size = VOCAB if l == 0 else HIDDEN
        key, k1, k2, k3, k4 = jax.random.split(key, 5)
        params["lstm"].append({
            "w_ih": jax.random.uniform(k1, (4 * HIDDEN, in_size),
                                       jnp.float32, -scale, scale),
            "w_hh": jax.random.uniform(k2, (4 * HIDDEN, HIDDEN),
                                       jnp.float32, -scale, scale),
            "b_ih": jax.random.uniform(k3, (4 * HIDDEN,), jnp.float32, -scale, scale),
            "b_hh": jax.random.uniform(k4, (4 * HIDDEN,), jnp.float32, -scale, scale),
        })
    key, k5, k6 = jax.random.split(key, 3)
    params["fc_w"] = jax.random.uniform(k5, (VOCAB, HIDDEN), jnp.float32, -scale, scale)
    params["fc_b"] = jax.random.uniform(k6, (VOCAB,), jnp.float32, -scale, scale)
    return params


if __name__ == "__main__":
    key = jax.random.PRNGKey(0)
    key, kx = jax.random.split(key)
    params = init_params(key)
    prepared = prepare_params(params)          # one-time weight prep

    x = jax.random.normal(kx, (BATCH, SEQ, VOCAB), jnp.float32)
    h0 = jnp.zeros((NUM_LAYERS, BATCH, HIDDEN), jnp.float32)   # initial_hidden_state
    c0 = jnp.zeros((NUM_LAYERS, BATCH, HIDDEN), jnp.float32)

    fwd = jax.jit(lstm_model_forward)
    out, hn, cn = fwd(prepared, x, h0, c0)
    jax.block_until_ready((out, hn, cn))

    assert out.shape == (BATCH * SEQ, VOCAB)
    assert hn.shape == (NUM_LAYERS, BATCH, HIDDEN)
    assert cn.shape == (NUM_LAYERS, BATCH, HIDDEN)

    ref_out, ref_hn, ref_cn = _ref_forward(params, x, h0, c0)
    assert jnp.allclose(out, ref_out, atol=1e-4), "output mismatch vs reference"
    assert jnp.allclose(hn, ref_hn, atol=1e-4), "hn mismatch vs reference"
    assert jnp.allclose(cn, ref_cn, atol=1e-4), "cn mismatch vs reference"

    print("KERNEL_OK")
</pallas_src>

<mosaic_0001>
module attributes {stable_mosaic.version = 11 : i64} {
  func.func @kernel(%arg0: memref<16x16xf32, #tpu.memory_space<vmem>>, %arg1: memref<2x2x32xf32, #tpu.memory_space<vmem>>, %arg2: memref<2x2x32xf32, #tpu.memory_space<vmem>>, %arg3: memref<16x128xf32, #tpu.memory_space<vmem>>, %arg4: memref<1x128xf32, #tpu.memory_space<vmem>>, %arg5: memref<96x128xf32, #tpu.memory_space<vmem>>, %arg6: memref<1x128xf32, #tpu.memory_space<vmem>>, %arg7: memref<32x16xf32, #tpu.memory_space<vmem>>, %arg8: memref<1x16xf32, #tpu.memory_space<vmem>>, %arg9: memref<16x16xf32, #tpu.memory_space<vmem>>, %arg10: memref<2x2x32xf32, #tpu.memory_space<vmem>>, %arg11: memref<2x2x32xf32, #tpu.memory_space<vmem>>, %arg12: memref<16x32xf32, #tpu.memory_space<vmem>>) attributes {dimension_semantics = [], scalar_prefetch = 0 : i64, scratch_operands = 1 : i64, tpu.core_type = #tpu.core_type<tc>} {
    %c0 = arith.constant 0 : index
    %c0_0 = arith.constant 0 : index
    %0 = vector.load %arg5[%c0, %c0_0] : memref<96x128xf32, #tpu.memory_space<vmem>>, vector<96x128xf32>
    %1 = vector.extract_strided_slice %0 {offsets = [0, 0], sizes = [32, 128], strides = [1, 1]} : vector<96x128xf32> to vector<32x128xf32>
    %2 = vector.extract_strided_slice %0 {offsets = [32, 0], sizes = [64, 128], strides = [1, 1]} : vector<96x128xf32> to vector<64x128xf32>
    %c0_1 = arith.constant 0 : index
    %c0_2 = arith.constant 0 : index
    %3 = vector.load %arg6[%c0_1, %c0_2] : memref<1x128xf32, #tpu.memory_space<vmem>>, vector<1x128xf32>
    %cst = arith.constant 0.000000e+00 : f32
    %4 = vector.broadcast %cst : f32 to vector<2x32xf32>
    %c0_3 = arith.constant 0 : index
    %c0_4 = arith.constant 0 : index
    %5 = vector.load %arg0[%c0_3, %c0_4] : memref<16x16xf32, #tpu.memory_space<vmem>>, vector<16x16xf32>
    %c0_5 = arith.constant 0 : index
    %c0_6 = arith.constant 0 : index
    %6 = vector.load %arg3[%c0_5, %c0_6] : memref<16x128xf32, #tpu.memory_space<vmem>>, vector<16x128xf32>
    %cst_7 = arith.constant dense<0.000000e+00> : vector<16x128xf32>
    %7 = tpu.matmul %5, %6, %cst_7 {dimension_numbers = #tpu.dot_dimension_numbers<[1], [0], [0], [1], [0, 0, 1, 1], [], []>} : vector<16x16xf32>, vector<16x128xf32>, vector<16x128xf32> -> vector<16x128xf32>
    %c0_8 = arith.constant 0 : index
    %c0_9 = arith.constant 0 : index
    %8 = vector.load %arg4[%c0_8, %c0_9] : memref<1x128xf32, #tpu.memory_space<vmem>>, vector<1x128xf32>
    %9 = vector.broadcast %8 : vector<1x128xf32> to vector<16x128xf32>
    %10 = arith.addf %7, %9 : vector<16x128xf32>
    %c0_10 = arith.constant 0 : index
    %c0_11 = arith.constant 0 : index
    %c0_12 = arith.constant 0 : index
    %11 = vector.load %arg1[%c0_10, %c0_11, %c0_12] : memref<2x2x32xf32, #tpu.memory_space<vmem>>, vector<1x2x32xf32>
    %12 = vector.shape_cast %11 : vector<1x2x32xf32> to vector<2x32xf32>
    %c0_13 = arith.constant 0 : index
    %c0_14 = arith.constant 0 : index
    %c0_15 = arith.constant 0 : index
    %13 = vector.load %arg2[%c0_13, %c0_14, %c0_15] : memref<2x2x32xf32, #tpu.memory_space<vmem>>, vector<1x2x32xf32>
    %14 = vector.shape_cast %13 : vector<1x2x32xf32> to vector<2x32xf32>
    %c1 = arith.constant 1 : index
    %c0_16 = arith.constant 0 : index
    %c0_17 = arith.constant 0 : index
    %15 = vector.load %arg1[%c1, %c0_16, %c0_17] : memref<2x2x32xf32, #tpu.memory_space<vmem>>, vector<1x2x32xf32>
    %16 = vector.shape_cast %15 : vector<1x2x32xf32> to vector<2x32xf32>
    %c1_18 = arith.constant 1 : index
    %c0_19 = arith.constant 0 : index
    %c0_20 = arith.constant 0 : index
    %17 = vector.load %arg2[%c1_18, %c0_19, %c0_20] : memref<2x2x32xf32, #tpu.memory_space<vmem>>, vector<1x2x32xf32>
    %18 = vector.shape_cast %17 : vector<1x2x32xf32> to vector<2x32xf32>
    %19 = vector.extract_strided_slice %10 {offsets = [0, 0], sizes = [2, 128], strides = [1, 1]} : vector<16x128xf32> to vector<2x128xf32>
    %cst_21 = arith.constant dense<0.000000e+00> : vector<2x128xf32>
    %20 = tpu.matmul %12, %1, %cst_21 {dimension_numbers = #tpu.dot_dimension_numbers<[1], [0], [0], [1], [0, 0, 1, 1], [], []>} : vector<2x32xf32>, vector<32x128xf32>, vector<2x128xf32> -> vector<2x128xf32>
    %21 = arith.addf %19, %20 : vector<2x128xf32>
    %22 = arith.negf %21 : vector<2x128xf32>
    %23 = math.exp %22 : vector<2x128xf32>
    %cst_22 = arith.constant 1.000000e+00 : f32
    %24 = vector.broadcast %cst_22 : f32 to vector<2x128xf32>
    %25 = arith.addf %24, %23 : vector<2x128xf32>
    %26 = arith.divf %24, %25 : vector<2x128xf32>
    %27 = vector.extract_strided_slice %26 {offsets = [0, 0], sizes = [2, 32], strides = [1, 1]} : vector<2x128xf32> to vector<2x32xf32>
    %28 = vector.extract_strided_slice %26 {offsets = [0, 32], sizes = [2, 32], strides = [1, 1]} : vector<2x128xf32> to vector<2x32xf32>
    %29 = vector.extract_strided_slice %26 {offsets = [0, 64], sizes = [2, 32], strides = [1, 1]} : vector<2x128xf32> to vector<2x32xf32>
    %cst_23 = arith.constant 2.000000e+00 : f32
    %30 = vector.broadcast %cst_23 : f32 to vector<2x32xf32>
    %31 = arith.mulf %30, %29 : vector<2x32xf32>
    %cst_24 = arith.constant 1.000000e+00 : f32
    %32 = vector.broadcast %cst_24 : f32 to vector<2x32xf32>
    %33 = arith.subf %31, %32 : vector<2x32xf32>
    %34 = vector.extract_strided_slice %26 {offsets = [0, 96], sizes = [2, 32], strides = [1, 1]} : vector<2x128xf32> to vector<2x32xf32>
    %35 = arith.mulf %28, %14 : vector<2x32xf32>
    %36 = arith.mulf %27, %33 : vector<2x32xf32>
    %37 = arith.addf %35, %36 : vector<2x32xf32>
    %38 = math.tanh %37 : vector<2x32xf32>
    %39 = arith.mulf %34, %38 : vector<2x32xf32>
    %40 = tpu.concatenate %39, %4, %4 in 1 : vector<2x32xf32>, vector<2x32xf32>, vector<2x32xf32> -> vector<2x96xf32>
    %41 = tpu.concatenate %4, %16, %4 in 1 : vector<2x32xf32>, vector<2x32xf32>, vector<2x32xf32> -> vector<2x96xf32>
    %42 = tpu.concatenate %4, %4, %39 in 1 : vector<2x32xf32>, vector<2x32xf32>, vector<2x32xf32> -> vector<2x96xf32>
    %43 = tpu.concatenate %40, %41, %42 in 0 : vector<2x96xf32>, vector<2x96xf32>, vector<2x96xf32> -> vector<6x96xf32>
    %cst_25 = arith.constant dense<0.000000e+00> : vector<6x128xf32>
    %44 = tpu.matmul %43, %0, %cst_25 {dimension_numbers = #tpu.dot_dimension_numbers<[1], [0], [0], [1], [0, 0, 1, 1], [], []>} : vector<6x96xf32>, vector<96x128xf32>, vector<6x128xf32> -> vector<6x128xf32>
    %45 = vector.extract_strided_slice %10 {offsets = [2, 0], sizes = [2, 128], strides = [1, 1]} : vector<16x128xf32> to vector<2x128xf32>
    %46 = vector.extract_strided_slice %44 {offsets = [0, 0], sizes = [2, 128], strides = [1, 1]} : vector<6x128xf32> to vector<2x128xf32>
    %47 = arith.addf %45, %46 : vector<2x128xf32>
    %48 = vector.extract_strided_slice %44 {offsets = [2, 0], sizes = [2, 128], strides = [1, 1]} : vector<6x128xf32> to vector<2x128xf32>
    %49 = vector.extract_strided_slice %44 {offsets = [4, 0], sizes = [2, 128], strides = [1, 1]} : vector<6x128xf32> to vector<2x128xf32>
    %50 = arith.addf %48, %49 : vector<2x128xf32>
    %51 = vector.broadcast %3 : vector<1x128xf32> to vector<2x128xf32>
    %52 = arith.addf %50, %51 : vector<2x128xf32>
    %53 = tpu.concatenate %47, %52 in 0 : vector<2x128xf32>, vector<2x128xf32> -> vector<4x128xf32>
    %54 = arith.negf %53 : vector<4x128xf32>
    %55 = math.exp %54 : vector<4x128xf32>
    %cst_26 = arith.constant 1.000000e+00 : f32
    %56 = vector.broadcast %cst_26 : f32 to vector<4x128xf32>
    %57 = arith.addf %56, %55 : vector<4x128xf32>
    %58 = arith.divf %56, %57 : vector<4x128xf32>
    %59 = vector.extract_strided_slice %58 {offsets = [0, 0], sizes = [4, 32], strides = [1, 1]} : vector<4x128xf32> to vector<4x32xf32>
    %60 = vector.extract_strided_slice %58 {offsets = [0, 32], sizes = [4, 32], strides = [1, 1]} : vector<4x128xf32> to vector<4x32xf32>
    %61 = vector.extract_strided_slice %58 {offsets = [0, 64], sizes = [4, 32], strides = [1, 1]} : vector<4x128xf32> to vector<4x32xf32>
    %cst_27 = arith.constant 2.000000e+00 : f32
    %62 = vector.broadcast %cst_27 : f32 to vector<4x32xf32>
    %63 = arith.mulf %62, %61 : vector<4x32xf32>
    %cst_28 = arith.constant 1.000000e+00 : f32
    %64 = vector.broadcast %cst_28 : f32 to vector<4x32xf32>
    %65 = arith.subf %63, %64 : vector<4x32xf32>
    %66 = vector.extract_strided_slice %58 {offsets = [0, 96], sizes = [4, 32], strides = [1, 1]} : vector<4x128xf32> to vector<4x32xf32>
    %67 = tpu.concatenate %37, %18 in 0 : vector<2x32xf32>, vector<2x32xf32> -> vector<4x32xf32>
    %68 = arith.mulf %60, %67 : vector<4x32xf32>
    %69 = arith.mulf %59, %65 : vector<4x32xf32>
    %70 = arith.addf %68, %69 : vector<4x32xf32>
    %71 = math.tanh %70 : vector<4x32xf32>
    %72 = arith.mulf %66, %71 : vector<4x32xf32>
    %73 = vector.extract_strided_slice %72 {offsets = [0, 0], sizes = [2, 32], strides = [1, 1]} : vector<4x32xf32> to vector<2x32xf32>
    %74 = vector.extract_strided_slice %72 {offsets = [2, 0], sizes = [2, 32], strides = [1, 1]} : vector<4x32xf32> to vector<2x32xf32>
    %75 = vector.extract_strided_slice %70 {offsets = [0, 0], sizes = [2, 32], strides = [1, 1]} : vector<4x32xf32> to vector<2x32xf32>
    %76 = vector.extract_strided_slice %70 {offsets = [2, 0], sizes = [2, 32], strides = [1, 1]} : vector<4x32xf32> to vector<2x32xf32>
    %c0_29 = arith.constant 0 : index
    %c0_30 = arith.constant 0 : index
    %77 = vector.load %arg12[%c0_29, %c0_30] : memref<16x32xf32, #tpu.memory_space<vmem>>, vector<2x32xf32>
    tpu.vector_store %arg12[%c0_29, %c0_30], %74 {strides = array<i32>} : memref<16x32xf32, #tpu.memory_space<vmem>>, vector<2x32xf32>,
    %78 = tpu.concatenate %73, %4, %4 in 1 : vector<2x32xf32>, vector<2x32xf32>, vector<2x32xf32> -> vector<2x96xf32>
    %79 = tpu.concatenate %4, %74, %4 in 1 : vector<2x32xf32>, vector<2x32xf32>, vector<2x32xf32> -> vector<2x96xf32>
    %80 = tpu.concatenate %4, %4, %73 in 1 : vector<2x32xf32>, vector<2x32xf32>, vector<2x32xf32> -> vector<2x96xf32>
    %81 = tpu.concatenate %78, %79, %80 in 0 : vector<2x96xf32>, vector<2x96xf32>, vector<2x96xf32> -> vector<6x96xf32>
    %cst_31 = arith.constant dense<0.000000e+00> : vector<6x128xf32>
    %82 = tpu.matmul %81, %0, %cst_31 {dimension_numbers = #tpu.dot_dimension_numbers<[1], [0], [0], [1], [0, 0, 1, 1], [], []>} : vector<6x96xf32>, vector<96x128xf32>, vector<6x128xf32> -> vector<6x128xf32>
    %83 = vector.extract_strided_slice %10 {offsets = [4, 0], sizes = [2, 128], strides = [1, 1]} : vector<16x128xf32> to vector<2x128xf32>
    %84 = vector.extract_strided_slice %82 {offsets = [0, 0], sizes = [2, 128], strides = [1, 1]} : vector<6x128xf32> to vector<2x128xf32>
    %85 = arith.addf %83, %84 : vector<2x128xf32>
    %86 = vector.extract_strided_slice %82 {offsets = [2, 0], sizes = [2, 128], strides = [1, 1]} : vector<6x128xf32> to vector<2x128xf32>
    %87 = vector.extract_strided_slice %82 {offsets = [4, 0], sizes = [2, 128], strides = [1, 1]} : vector<6x128xf32> to vector<2x128xf32>
    %88 = arith.addf %86, %87 : vector<2x128xf32>
    %89 = vector.broadcast %3 : vector<1x128xf32> to vector<2x128xf32>
    %90 = arith.addf %88, %89 : vector<2x128xf32>
    %91 = tpu.concatenate %85, %90 in 0 : vector<2x128xf32>, vector<2x128xf32> -> vector<4x128xf32>
    %92 = arith.negf %91 : vector<4x128xf32>
    %93 = math.exp %92 : vector<4x128xf32>
    %cst_32 = arith.constant 1.000000e+00 : f32
    %94 = vector.broadcast %cst_32 : f32 to vector<4x128xf32>
    %95 = arith.addf %94, %93 : vector<4x128xf32>
    %96 = arith.divf %94, %95 : vector<4x128xf32>
    %97 = vector.extract_strided_slice %96 {offsets = [0, 0], sizes = [4, 32], strides = [1, 1]} : vector<4x128xf32> to vector<4x32xf32>
    %98 = vector.extract_strided_slice %96 {offsets = [0, 32], sizes = [4, 32], strides = [1, 1]} : vector<4x128xf32> to vector<4x32xf32>
    %99 = vector.extract_strided_slice %96 {offsets = [0, 64], sizes = [4, 32], strides = [1, 1]} : vector<4x128xf32> to vector<4x32xf32>
    %cst_33 = arith.constant 2.000000e+00 : f32
    %100 = vector.broadcast %cst_33 : f32 to vector<4x32xf32>
    %101 = arith.mulf %100, %99 : vector<4x32xf32>
    %cst_34 = arith.constant 1.000000e+00 : f32
    %102 = vector.broadcast %cst_34 : f32 to vector<4x32xf32>
    %103 = arith.subf %101, %102 : vector<4x32xf32>
    %104 = vector.extract_strided_slice %96 {offsets = [0, 96], sizes = [4, 32], strides = [1, 1]} : vector<4x128xf32> to vector<4x32xf32>
    %105 = tpu.concatenate %75, %76 in 0 : vector<2x32xf32>, vector<2x32xf32> -> vector<4x32xf32>
    %106 = arith.mulf %98, %105 : vector<4x32xf32>
    %107 = arith.mulf %97, %103 : vector<4x32xf32>
    %108 = arith.addf %106, %107 : vector<4x32xf32>
    %109 = math.tanh %108 : vector<4x32xf32>
    %110 = arith.mulf %104, %109 : vector<4x32xf32>
    %111 = vector.extract_strided_slice %110 {offsets = [0, 0], sizes = [2, 32], strides = [1, 1]} : vector<4x32xf32> to vector<2x32xf32>
    %112 = vector.extract_strided_slice %110 {offsets = [2, 0], sizes = [2, 32], strides = [1, 1]} : vector<4x32xf32> to vector<2x32xf32>
    %113 = vector.extract_strided_slice %108 {offsets = [0, 0], sizes = [2, 32], strides = [1, 1]} : vector<4x32xf32> to vector<2x32xf32>
    %114 = vector.extract_strided_slice %108 {offsets = [2, 0], sizes = [2, 32], strides = [1, 1]} : vector<4x32xf32> to vector<2x32xf32>
    %c2 = arith.constant 2 : index
    %c0_35 = arith.constant 0 : index
    %115 = vector.load %arg12[%c2, %c0_35] : memref<16x32xf32, #tpu.memory_space<vmem>>, vector<2x32xf32>
    tpu.vector_store %arg12[%c2, %c0_35], %112 {strides = array<i32>} : memref<16x32xf32, #tpu.memory_space<vmem>>, vector<2x32xf32>,
    %116 = tpu.concatenate %111, %4, %4 in 1 : vector<2x32xf32>, vector<2x32xf32>, vector<2x32xf32> -> vector<2x96xf32>
    %117 = tpu.concatenate %4, %112, %4 in 1 : vector<2x32xf32>, vector<2x32xf32>, vector<2x32xf32> -> vector<2x96xf32>
    %118 = tpu.concatenate %4, %4, %111 in 1 : vector<2x32xf32>, vector<2x32xf32>, vector<2x32xf32> -> vector<2x96xf32>
    %119 = tpu.concatenate %116, %117, %118 in 0 : vector<2x96xf32>, vector<2x96xf32>, vector<2x96xf32> -> vector<6x96xf32>
    %cst_36 = arith.constant dense<0.000000e+00> : vector<6x128xf32>
    %120 = tpu.matmul %119, %0, %cst_36 {dimension_numbers = #tpu.dot_dimension_numbers<[1], [0], [0], [1], [0, 0, 1, 1], [], []>} : vector<6x96xf32>, vector<96x128xf32>, vector<6x128xf32> -> vector<6x128xf32>
    %121 = vector.extract_strided_slice %10 {offsets = [6, 0], sizes = [2, 128], strides = [1, 1]} : vector<16x128xf32> to vector<2x128xf32>
    %122 = vector.extract_strided_slice %120 {offsets = [0, 0], sizes = [2, 128], strides = [1, 1]} : vector<6x128xf32> to vector<2x128xf32>
    %123 = arith.addf %121, %122 : vector<2x128xf32>
    %124 = vector.extract_strided_slice %120 {offsets = [2, 0], sizes = [2, 128], strides = [1, 1]} : vector<6x128xf32> to vector<2x128xf32>
    %125 = vector.extract_strided_slice %120 {offsets = [4, 0], sizes = [2, 128], strides = [1, 1]} : vector<6x128xf32> to vector<2x128xf32>
    %126 = arith.addf %124, %125 : vector<2x128xf32>
    %127 = vector.broadcast %3 : vector<1x128xf32> to vector<2x128xf32>
    %128 = arith.addf %126, %127 : vector<2x128xf32>
    %129 = tpu.concatenate %123, %128 in 0 : vector<2x128xf32>, vector<2x128xf32> -> vector<4x128xf32>
    %130 = arith.negf %129 : vector<4x128xf32>
    %131 = math.exp %130 : vector<4x128xf32>
    %cst_37 = arith.constant 1.000000e+00 : f32
    %132 = vector.broadcast %cst_37 : f32 to vector<4x128xf32>
    %133 = arith.addf %132, %131 : vector<4x128xf32>
    %134 = arith.divf %132, %133 : vector<4x128xf32>
    %135 = vector.extract_strided_slice %134 {offsets = [0, 0], sizes = [4, 32], strides = [1, 1]} : vector<4x128xf32> to vector<4x32xf32>
    %136 = vector.extract_strided_slice %134 {offsets = [0, 32], sizes = [4, 32], strides = [1, 1]} : vector<4x128xf32> to vector<4x32xf32>
    %137 = vector.extract_strided_slice %134 {offsets = [0, 64], sizes = [4, 32], strides = [1, 1]} : vector<4x128xf32> to vector<4x32xf32>
    %cst_38 = arith.constant 2.000000e+00 : f32
    %138 = vector.broadcast %cst_38 : f32 to vector<4x32xf32>
    %139 = arith.mulf %138, %137 : vector<4x32xf32>
    %cst_39 = arith.constant 1.000000e+00 : f32
    %140 = vector.broadcast %cst_39 : f32 to vector<4x32xf32>
    %141 = arith.subf %139, %140 : vector<4x32xf32>
    %142 = vector.extract_strided_slice %134 {offsets = [0, 96], sizes = [4, 32], strides = [1, 1]} : vector<4x128xf32> to vector<4x32xf32>
    %143 = tpu.concatenate %113, %114 in 0 : vector<2x32xf32>, vector<2x32xf32> -> vector<4x32xf32>
    %144 = arith.mulf %136, %143 : vector<4x32xf32>
    %145 = arith.mulf %135, %141 : vector<4x32xf32>
    %146 = arith.addf %144, %145 : vector<4x32xf32>
    %147 = math.tanh %146 : vector<4x32xf32>
    %148 = arith.mulf %142, %147 : vector<4x32xf32>
    %149 = vector.extract_strided_slice %148 {offsets = [0, 0], sizes = [2, 32], strides = [1, 1]} : vector<4x32xf32> to vector<2x32xf32>
    %150 = vector.extract_strided_slice %148 {offsets = [2, 0], sizes = [2, 32], strides = [1, 1]} : vector<4x32xf32> to vector<2x32xf32>
    %151 = vector.extract_strided_slice %146 {offsets = [0, 0], sizes = [2, 32], strides = [1, 1]} : vector<4x32xf32> to vector<2x32xf32>
    %152 = vector.extract_strided_slice %146 {offsets = [2, 0], sizes = [2, 32], strides = [1, 1]} : vector<4x32xf32> to vector<2x32xf32>
    %c4 = arith.constant 4 : index
    %c0_40 = arith.constant 0 : index
    %153 = vector.load %arg12[%c4, %c0_40] : memref<16x32xf32, #tpu.memory_space<vmem>>, vector<2x32xf32>
    tpu.vector_store %arg12[%c4, %c0_40], %150 {strides = array<i32>} : memref<16x32xf32, #tpu.memory_space<vmem>>, vector<2x32xf32>,
    %154 = tpu.concatenate %149, %4, %4 in 1 : vector<2x32xf32>, vector<2x32xf32>, vector<2x32xf32> -> vector<2x96xf32>
    %155 = tpu.concatenate %4, %150, %4 in 1 : vector<2x32xf32>, vector<2x32xf32>, vector<2x32xf32> -> vector<2x96xf32>
    %156 = tpu.concatenate %4, %4, %149 in 1 : vector<2x32xf32>, vector<2x32xf32>, vector<2x32xf32> -> vector<2x96xf32>
    %157 = tpu.concatenate %154, %155, %156 in 0 : vector<2x96xf32>, vector<2x96xf32>, vector<2x96xf32> -> vector<6x96xf32>
    %cst_41 = arith.constant dense<0.000000e+00> : vector<6x128xf32>
    %158 = tpu.matmul %157, %0, %cst_41 {dimension_numbers = #tpu.dot_dimension_numbers<[1], [0], [0], [1], [0, 0, 1, 1], [], []>} : vector<6x96xf32>, vector<96x128xf32>, vector<6x128xf32> -> vector<6x128xf32>
    %159 = vector.extract_strided_slice %10 {offsets = [8, 0], sizes = [2, 128], strides = [1, 1]} : vector<16x128xf32> to vector<2x128xf32>
    %160 = vector.extract_strided_slice %158 {offsets = [0, 0], sizes = [2, 128], strides = [1, 1]} : vector<6x128xf32> to vector<2x128xf32>
    %161 = arith.addf %159, %160 : vector<2x128xf32>
    %162 = vector.extract_strided_slice %158 {offsets = [2, 0], sizes = [2, 128], strides = [1, 1]} : vector<6x128xf32> to vector<2x128xf32>
    %163 = vector.extract_strided_slice %158 {offsets = [4, 0], sizes = [2, 128], strides = [1, 1]} : vector<6x128xf32> to vector<2x128xf32>
    %164 = arith.addf %162, %163 : vector<2x128xf32>
    %165 = vector.broadcast %3 : vector<1x128xf32> to vector<2x128xf32>
    %166 = arith.addf %164, %165 : vector<2x128xf32>
    %167 = tpu.concatenate %161, %166 in 0 : vector<2x128xf32>, vector<2x128xf32> -> vector<4x128xf32>
    %168 = arith.negf %167 : vector<4x128xf32>
    %169 = math.exp %168 : vector<4x128xf32>
    %cst_42 = arith.constant 1.000000e+00 : f32
    %170 = vector.broadcast %cst_42 : f32 to vector<4x128xf32>
    %171 = arith.addf %170, %169 : vector<4x128xf32>
    %172 = arith.divf %170, %171 : vector<4x128xf32>
    %173 = vector.extract_strided_slice %172 {offsets = [0, 0], sizes = [4, 32], strides = [1, 1]} : vector<4x128xf32> to vector<4x32xf32>
    %174 = vector.extract_strided_slice %172 {offsets = [0, 32], sizes = [4, 32], strides = [1, 1]} : vector<4x128xf32> to vector<4x32xf32>
    %175 = vector.extract_strided_slice %172 {offsets = [0, 64], sizes = [4, 32], strides = [1, 1]} : vector<4x128xf32> to vector<4x32xf32>
    %cst_43 = arith.constant 2.000000e+00 : f32
    %176 = vector.broadcast %cst_43 : f32 to vector<4x32xf32>
    %177 = arith.mulf %176, %175 : vector<4x32xf32>
    %cst_44 = arith.constant 1.000000e+00 : f32
    %178 = vector.broadcast %cst_44 : f32 to vector<4x32xf32>
    %179 = arith.subf %177, %178 : vector<4x32xf32>
    %180 = vector.extract_strided_slice %172 {offsets = [0, 96], sizes = [4, 32], strides = [1, 1]} : vector<4x128xf32> to vector<4x32xf32>
    %181 = tpu.concatenate %151, %152 in 0 : vector<2x32xf32>, vector<2x32xf32> -> vector<4x32xf32>
    %182 = arith.mulf %174, %181 : vector<4x32xf32>
    %183 = arith.mulf %173, %179 : vector<4x32xf32>
    %184 = arith.addf %182, %183 : vector<4x32xf32>
    %185 = math.tanh %184 : vector<4x32xf32>
    %186 = arith.mulf %180, %185 : vector<4x32xf32>
    %187 = vector.extract_strided_slice %186 {offsets = [0, 0], sizes = [2, 32], strides = [1, 1]} : vector<4x32xf32> to vector<2x32xf32>
    %188 = vector.extract_strided_slice %186 {offsets = [2, 0], sizes = [2, 32], strides = [1, 1]} : vector<4x32xf32> to vector<2x32xf32>
    %189 = vector.extract_strided_slice %184 {offsets = [0, 0], sizes = [2, 32], strides = [1, 1]} : vector<4x32xf32> to vector<2x32xf32>
    %190 = vector.extract_strided_slice %184 {offsets = [2, 0], sizes = [2, 32], strides = [1, 1]} : vector<4x32xf32> to vector<2x32xf32>
    %c6 = arith.constant 6 : index
    %c0_45 = arith.constant 0 : index
    %191 = vector.load %arg12[%c6, %c0_45] : memref<16x32xf32, #tpu.memory_space<vmem>>, vector<2x32xf32>
    tpu.vector_store %arg12[%c6, %c0_45], %188 {strides = array<i32>} : memref<16x32xf32, #tpu.memory_space<vmem>>, vector<2x32xf32>,
    %192 = tpu.concatenate %187, %4, %4 in 1 : vector<2x32xf32>, vector<2x32xf32>, vector<2x32xf32> -> vector<2x96xf32>
    %193 = tpu.concatenate %4, %188, %4 in 1 : vector<2x32xf32>, vector<2x32xf32>, vector<2x32xf32> -> vector<2x96xf32>
    %194 = tpu.concatenate %4, %4, %187 in 1 : vector<2x32xf32>, vector<2x32xf32>, vector<2x32xf32> -> vector<2x96xf32>
    %195 = tpu.concatenate %192, %193, %194 in 0 : vector<2x96xf32>, vector<2x96xf32>, vector<2x96xf32> -> vector<6x96xf32>
    %cst_46 = arith.constant dense<0.000000e+00> : vector<6x128xf32>
    %196 = tpu.matmul %195, %0, %cst_46 {dimension_numbers = #tpu.dot_dimension_numbers<[1], [0], [0], [1], [0, 0, 1, 1], [], []>} : vector<6x96xf32>, vector<96x128xf32>, vector<6x128xf32> -> vector<6x128xf32>
    %197 = vector.extract_strided_slice %10 {offsets = [10, 0], sizes = [2, 128], strides = [1, 1]} : vector<16x128xf32> to vector<2x128xf32>
    %198 = vector.extract_strided_slice %196 {offsets = [0, 0], sizes = [2, 128], strides = [1, 1]} : vector<6x128xf32> to vector<2x128xf32>
    %199 = arith.addf %197, %198 : vector<2x128xf32>
    %200 = vector.extract_strided_slice %196 {offsets = [2, 0], sizes = [2, 128], strides = [1, 1]} : vector<6x128xf32> to vector<2x128xf32>
    %201 = vector.extract_strided_slice %196 {offsets = [4, 0], sizes = [2, 128], strides = [1, 1]} : vector<6x128xf32> to vector<2x128xf32>
    %202 = arith.addf %200, %201 : vector<2x128xf32>
    %203 = vector.broadcast %3 : vector<1x128xf32> to vector<2x128xf32>
    %204 = arith.addf %202, %203 : vector<2x128xf32>
    %205 = tpu.concatenate %199, %204 in 0 : vector<2x128xf32>, vector<2x128xf32> -> vector<4x128xf32>
    %206 = arith.negf %205 : vector<4x128xf32>
    %207 = math.exp %206 : vector<4x128xf32>
    %cst_47 = arith.constant 1.000000e+00 : f32
    %208 = vector.broadcast %cst_47 : f32 to vector<4x128xf32>
    %209 = arith.addf %208, %207 : vector<4x128xf32>
    %210 = arith.divf %208, %209 : vector<4x128xf32>
    %211 = vector.extract_strided_slice %210 {offsets = [0, 0], sizes = [4, 32], strides = [1, 1]} : vector<4x128xf32> to vector<4x32xf32>
    %212 = vector.extract_strided_slice %210 {offsets = [0, 32], sizes = [4, 32], strides = [1, 1]} : vector<4x128xf32> to vector<4x32xf32>
    %213 = vector.extract_strided_slice %210 {offsets = [0, 64], sizes = [4, 32], strides = [1, 1]} : vector<4x128xf32> to vector<4x32xf32>
    %cst_48 = arith.constant 2.000000e+00 : f32
    %214 = vector.broadcast %cst_48 : f32 to vector<4x32xf32>
    %215 = arith.mulf %214, %213 : vector<4x32xf32>
    %cst_49 = arith.constant 1.000000e+00 : f32
    %216 = vector.broadcast %cst_49 : f32 to vector<4x32xf32>
    %217 = arith.subf %215, %216 : vector<4x32xf32>
    %218 = vector.extract_strided_slice %210 {offsets = [0, 96], sizes = [4, 32], strides = [1, 1]} : vector<4x128xf32> to vector<4x32xf32>
    %219 = tpu.concatenate %189, %190 in 0 : vector<2x32xf32>, vector<2x32xf32> -> vector<4x32xf32>
    %220 = arith.mulf %212, %219 : vector<4x32xf32>
    %221 = arith.mulf %211, %217 : vector<4x32xf32>
    %222 = arith.addf %220, %221 : vector<4x32xf32>
    %223 = math.tanh %222 : vector<4x32xf32>
    %224 = arith.mulf %218, %223 : vector<4x32xf32>
    %225 = vector.extract_strided_slice %224 {offsets = [0, 0], sizes = [2, 32], strides = [1, 1]} : vector<4x32xf32> to vector<2x32xf32>
    %226 = vector.extract_strided_slice %224 {offsets = [2, 0], sizes = [2, 32], strides = [1, 1]} : vector<4x32xf32> to vector<2x32xf32>
    %227 = vector.extract_strided_slice %222 {offsets = [0, 0], sizes = [2, 32], strides = [1, 1]} : vector<4x32xf32> to vector<2x32xf32>
    %228 = vector.extract_strided_slice %222 {offsets = [2, 0], sizes = [2, 32], strides = [1, 1]} : vector<4x32xf32> to vector<2x32xf32>
    %c8 = arith.constant 8 : index
    %c0_50 = arith.constant 0 : index
    %229 = vector.load %arg12[%c8, %c0_50] : memref<16x32xf32, #tpu.memory_space<vmem>>, vector<2x32xf32>
    tpu.vector_store %arg12[%c8, %c0_50], %226 {strides = array<i32>} : memref<16x32xf32, #tpu.memory_space<vmem>>, vector<2x32xf32>,
    %230 = tpu.concatenate %225, %4, %4 in 1 : vector<2x32xf32>, vector<2x32xf32>, vector<2x32xf32> -> vector<2x96xf32>
    %231 = tpu.concatenate %4, %226, %4 in 1 : vector<2x32xf32>, vector<2x32xf32>, vector<2x32xf32> -> vector<2x96xf32>
    %232 = tpu.concatenate %4, %4, %225 in 1 : vector<2x32xf32>, vector<2x32xf32>, vector<2x32xf32> -> vector<2x96xf32>
    %233 = tpu.concatenate %230, %231, %232 in 0 : vector<2x96xf32>, vector<2x96xf32>, vector<2x96xf32> -> vector<6x96xf32>
    %cst_51 = arith.constant dense<0.000000e+00> : vector<6x128xf32>
    %234 = tpu.matmul %233, %0, %cst_51 {dimension_numbers = #tpu.dot_dimension_numbers<[1], [0], [0], [1], [0, 0, 1, 1], [], []>} : vector<6x96xf32>, vector<96x128xf32>, vector<6x128xf32> -> vector<6x128xf32>
    %235 = vector.extract_strided_slice %10 {offsets = [12, 0], sizes = [2, 128], strides = [1, 1]} : vector<16x128xf32> to vector<2x128xf32>
    %236 = vector.extract_strided_slice %234 {offsets = [0, 0], sizes = [2, 128], strides = [1, 1]} : vector<6x128xf32> to vector<2x128xf32>
    %237 = arith.addf %235, %236 : vector<2x128xf32>
    %238 = vector.extract_strided_slice %234 {offsets = [2, 0], sizes = [2, 128], strides = [1, 1]} : vector<6x128xf32> to vector<2x128xf32>
    %239 = vector.extract_strided_slice %234 {offsets = [4, 0], sizes = [2, 128], strides = [1, 1]} : vector<6x128xf32> to vector<2x128xf32>
    %240 = arith.addf %238, %239 : vector<2x128xf32>
    %241 = vector.broadcast %3 : vector<1x128xf32> to vector<2x128xf32>
    %242 = arith.addf %240, %241 : vector<2x128xf32>
    %243 = tpu.concatenate %237, %242 in 0 : vector<2x128xf32>, vector<2x128xf32> -> vector<4x128xf32>
    %244 = arith.negf %243 : vector<4x128xf32>
    %245 = math.exp %244 : vector<4x128xf32>
    %cst_52 = arith.constant 1.000000e+00 : f32
    %246 = vector.broadcast %cst_52 : f32 to vector<4x128xf32>
    %247 = arith.addf %246, %245 : vector<4x128xf32>
    %248 = arith.divf %246, %247 : vector<4x128xf32>
    %249 = vector.extract_strided_slice %248 {offsets = [0, 0], sizes = [4, 32], strides = [1, 1]} : vector<4x128xf32> to vector<4x32xf32>
    %250 = vector.extract_strided_slice %248 {offsets = [0, 32], sizes = [4, 32], strides = [1, 1]} : vector<4x128xf32> to vector<4x32xf32>
    %251 = vector.extract_strided_slice %248 {offsets = [0, 64], sizes = [4, 32], strides = [1, 1]} : vector<4x128xf32> to vector<4x32xf32>
    %cst_53 = arith.constant 2.000000e+00 : f32
    %252 = vector.broadcast %cst_53 : f32 to vector<4x32xf32>
    %253 = arith.mulf %252, %251 : vector<4x32xf32>
    %cst_54 = arith.constant 1.000000e+00 : f32
    %254 = vector.broadcast %cst_54 : f32 to vector<4x32xf32>
    %255 = arith.subf %253, %254 : vector<4x32xf32>
    %256 = vector.extract_strided_slice %248 {offsets = [0, 96], sizes = [4, 32], strides = [1, 1]} : vector<4x128xf32> to vector<4x32xf32>
    %257 = tpu.concatenate %227, %228 in 0 : vector<2x32xf32>, vector<2x32xf32> -> vector<4x32xf32>
    %258 = arith.mulf %250, %257 : vector<4x32xf32>
    %259 = arith.mulf %249, %255 : vector<4x32xf32>
    %260 = arith.addf %258, %259 : vector<4x32xf32>
    %261 = math.tanh %260 : vector<4x32xf32>
    %262 = arith.mulf %256, %261 : vector<4x32xf32>
    %263 = vector.extract_strided_slice %262 {offsets = [0, 0], sizes = [2, 32], strides = [1, 1]} : vector<4x32xf32> to vector<2x32xf32>
    %264 = vector.extract_strided_slice %262 {offsets = [2, 0], sizes = [2, 32], strides = [1, 1]} : vector<4x32xf32> to vector<2x32xf32>
    %265 = vector.extract_strided_slice %260 {offsets = [0, 0], sizes = [2, 32], strides = [1, 1]} : vector<4x32xf32> to vector<2x32xf32>
    %266 = vector.extract_strided_slice %260 {offsets = [2, 0], sizes = [2, 32], strides = [1, 1]} : vector<4x32xf32> to vector<2x32xf32>
    %c10 = arith.constant 10 : index
    %c0_55 = arith.constant 0 : index
    %267 = vector.load %arg12[%c10, %c0_55] : memref<16x32xf32, #tpu.memory_space<vmem>>, vector<2x32xf32>
    tpu.vector_store %arg12[%c10, %c0_55], %264 {strides = array<i32>} : memref<16x32xf32, #tpu.memory_space<vmem>>, vector<2x32xf32>,
    %268 = tpu.concatenate %263, %4, %4 in 1 : vector<2x32xf32>, vector<2x32xf32>, vector<2x32xf32> -> vector<2x96xf32>
    %269 = tpu.concatenate %4, %264, %4 in 1 : vector<2x32xf32>, vector<2x32xf32>, vector<2x32xf32> -> vector<2x96xf32>
    %270 = tpu.concatenate %4, %4, %263 in 1 : vector<2x32xf32>, vector<2x32xf32>, vector<2x32xf32> -> vector<2x96xf32>
    %271 = tpu.concatenate %268, %269, %270 in 0 : vector<2x96xf32>, vector<2x96xf32>, vector<2x96xf32> -> vector<6x96xf32>
    %cst_56 = arith.constant dense<0.000000e+00> : vector<6x128xf32>
    %272 = tpu.matmul %271, %0, %cst_56 {dimension_numbers = #tpu.dot_dimension_numbers<[1], [0], [0], [1], [0, 0, 1, 1], [], []>} : vector<6x96xf32>, vector<96x128xf32>, vector<6x128xf32> -> vector<6x128xf32>
    %273 = vector.extract_strided_slice %10 {offsets = [14, 0], sizes = [2, 128], strides = [1, 1]} : vector<16x128xf32> to vector<2x128xf32>
    %274 = vector.extract_strided_slice %272 {offsets = [0, 0], sizes = [2, 128], strides = [1, 1]} : vector<6x128xf32> to vector<2x128xf32>
    %275 = arith.addf %273, %274 : vector<2x128xf32>
    %276 = vector.extract_strided_slice %272 {offsets = [2, 0], sizes = [2, 128], strides = [1, 1]} : vector<6x128xf32> to vector<2x128xf32>
    %277 = vector.extract_strided_slice %272 {offsets = [4, 0], sizes = [2, 128], strides = [1, 1]} : vector<6x128xf32> to vector<2x128xf32>
    %278 = arith.addf %276, %277 : vector<2x128xf32>
    %279 = vector.broadcast %3 : vector<1x128xf32> to vector<2x128xf32>
    %280 = arith.addf %278, %279 : vector<2x128xf32>
    %281 = tpu.concatenate %275, %280 in 0 : vector<2x128xf32>, vector<2x128xf32> -> vector<4x128xf32>
    %282 = arith.negf %281 : vector<4x128xf32>
    %283 = math.exp %282 : vector<4x128xf32>
    %cst_57 = arith.constant 1.000000e+00 : f32
    %284 = vector.broadcast %cst_57 : f32 to vector<4x128xf32>
    %285 = arith.addf %284, %283 : vector<4x128xf32>
    %286 = arith.divf %284, %285 : vector<4x128xf32>
    %287 = vector.extract_strided_slice %286 {offsets = [0, 0], sizes = [4, 32], strides = [1, 1]} : vector<4x128xf32> to vector<4x32xf32>
    %288 = vector.extract_strided_slice %286 {offsets = [0, 32], sizes = [4, 32], strides = [1, 1]} : vector<4x128xf32> to vector<4x32xf32>
    %289 = vector.extract_strided_slice %286 {offsets = [0, 64], sizes = [4, 32], strides = [1, 1]} : vector<4x128xf32> to vector<4x32xf32>
    %cst_58 = arith.constant 2.000000e+00 : f32
    %290 = vector.broadcast %cst_58 : f32 to vector<4x32xf32>
    %291 = arith.mulf %290, %289 : vector<4x32xf32>
    %cst_59 = arith.constant 1.000000e+00 : f32
    %292 = vector.broadcast %cst_59 : f32 to vector<4x32xf32>
    %293 = arith.subf %291, %292 : vector<4x32xf32>
    %294 = vector.extract_strided_slice %286 {offsets = [0, 96], sizes = [4, 32], strides = [1, 1]} : vector<4x128xf32> to vector<4x32xf32>
    %295 = tpu.concatenate %265, %266 in 0 : vector<2x32xf32>, vector<2x32xf32> -> vector<4x32xf32>
    %296 = arith.mulf %288, %295 : vector<4x32xf32>
    %297 = arith.mulf %287, %293 : vector<4x32xf32>
    %298 = arith.addf %296, %297 : vector<4x32xf32>
    %299 = math.tanh %298 : vector<4x32xf32>
    %300 = arith.mulf %294, %299 : vector<4x32xf32>
    %301 = vector.extract_strided_slice %300 {offsets = [0, 0], sizes = [2, 32], strides = [1, 1]} : vector<4x32xf32> to vector<2x32xf32>
    %302 = vector.extract_strided_slice %300 {offsets = [2, 0], sizes = [2, 32], strides = [1, 1]} : vector<4x32xf32> to vector<2x32xf32>
    %303 = vector.extract_strided_slice %298 {offsets = [0, 0], sizes = [2, 32], strides = [1, 1]} : vector<4x32xf32> to vector<2x32xf32>
    %304 = vector.extract_strided_slice %298 {offsets = [2, 0], sizes = [2, 32], strides = [1, 1]} : vector<4x32xf32> to vector<2x32xf32>
    %c12 = arith.constant 12 : index
    %c0_60 = arith.constant 0 : index
    %305 = vector.load %arg12[%c12, %c0_60] : memref<16x32xf32, #tpu.memory_space<vmem>>, vector<2x32xf32>
    tpu.vector_store %arg12[%c12, %c0_60], %302 {strides = array<i32>} : memref<16x32xf32, #tpu.memory_space<vmem>>, vector<2x32xf32>,
    %306 = tpu.concatenate %302, %4 in 1 : vector<2x32xf32>, vector<2x32xf32> -> vector<2x64xf32>
    %307 = tpu.concatenate %4, %301 in 1 : vector<2x32xf32>, vector<2x32xf32> -> vector<2x64xf32>
    %308 = tpu.concatenate %306, %307 in 0 : vector<2x64xf32>, vector<2x64xf32> -> vector<4x64xf32>
    %cst_61 = arith.constant dense<0.000000e+00> : vector<4x128xf32>
    %309 = tpu.matmul %308, %2, %cst_61 {dimension_numbers = #tpu.dot_dimension_numbers<[1], [0], [0], [1], [0, 0, 1, 1], [], []>} : vector<4x64xf32>, vector<64x128xf32>, vector<4x128xf32> -> vector<4x128xf32>
    %310 = vector.extract_strided_slice %309 {offsets = [0, 0], sizes = [2, 128], strides = [1, 1]} : vector<4x128xf32> to vector<2x128xf32>
    %311 = vector.extract_strided_slice %309 {offsets = [2, 0], sizes = [2, 128], strides = [1, 1]} : vector<4x128xf32> to vector<2x128xf32>
    %312 = arith.addf %310, %311 : vector<2x128xf32>
    %313 = vector.broadcast %3 : vector<1x128xf32> to vector<2x128xf32>
    %314 = arith.addf %312, %313 : vector<2x128xf32>
    %315 = arith.negf %314 : vector<2x128xf32>
    %316 = math.exp %315 : vector<2x128xf32>
    %cst_62 = arith.constant 1.000000e+00 : f32
    %317 = vector.broadcast %cst_62 : f32 to vector<2x128xf32>
    %318 = arith.addf %317, %316 : vector<2x128xf32>
    %319 = arith.divf %317, %318 : vector<2x128xf32>
    %320 = vector.extract_strided_slice %319 {offsets = [0, 0], sizes = [2, 32], strides = [1, 1]} : vector<2x128xf32> to vector<2x32xf32>
    %321 = vector.extract_strided_slice %319 {offsets = [0, 32], sizes = [2, 32], strides = [1, 1]} : vector<2x128xf32> to vector<2x32xf32>
    %322 = vector.extract_strided_slice %319 {offsets = [0, 64], sizes = [2, 32], strides = [1, 1]} : vector<2x128xf32> to vector<2x32xf32>
    %cst_63 = arith.constant 2.000000e+00 : f32
    %323 = vector.broadcast %cst_63 : f32 to vector<2x32xf32>
    %324 = arith.mulf %323, %322 : vector<2x32xf32>
    %cst_64 = arith.constant 1.000000e+00 : f32
    %325 = vector.broadcast %cst_64 : f32 to vector<2x32xf32>
    %326 = arith.subf %324, %325 : vector<2x32xf32>
    %327 = vector.extract_strided_slice %319 {offsets = [0, 96], sizes = [2, 32], strides = [1, 1]} : vector<2x128xf32> to vector<2x32xf32>
    %328 = arith.mulf %321, %304 : vector<2x32xf32>
    %329 = arith.mulf %320, %326 : vector<2x32xf32>
    %330 = arith.addf %328, %329 : vector<2x32xf32>
    %331 = math.tanh %330 : vector<2x32xf32>
    %332 = arith.mulf %327, %331 : vector<2x32xf32>
    %c14 = arith.constant 14 : index
    %c0_65 = arith.constant 0 : index
    %333 = vector.load %arg12[%c14, %c0_65] : memref<16x32xf32, #tpu.memory_space<vmem>>, vector<2x32xf32>
    tpu.vector_store %arg12[%c14, %c0_65], %332 {strides = array<i32>} : memref<16x32xf32, #tpu.memory_space<vmem>>, vector<2x32xf32>,
    %c0_66 = arith.constant 0 : index
    %c0_67 = arith.constant 0 : index
    %c0_68 = arith.constant 0 : index
    %334 = vector.load %arg10[%c0_66, %c0_67, %c0_68] : memref<2x2x32xf32, #tpu.memory_space<vmem>>, vector<1x2x32xf32>
    %335 = vector.shape_cast %334 : vector<1x2x32xf32> to vector<2x32xf32>
    %336 = vector.shape_cast %301 : vector<2x32xf32> to vector<1x2x32xf32>
    tpu.vector_store %arg10[%c0_66, %c0_67, %c0_68], %336 {strides = array<i32>} : memref<2x2x32xf32, #tpu.memory_space<vmem>>, vector<1x2x32xf32>,
    %c1_69 = arith.constant 1 : index
    %c0_70 = arith.constant 0 : index
    %c0_71 = arith.constant 0 : index
    %337 = vector.load %arg10[%c1_69, %c0_70, %c0_71] : memref<2x2x32xf32, #tpu.memory_space<vmem>>, vector<1x2x32xf32>
    %338 = vector.shape_cast %337 : vector<1x2x32xf32> to vector<2x32xf32>
    %339 = vector.shape_cast %332 : vector<2x32xf32> to vector<1x2x32xf32>
    tpu.vector_store %arg10[%c1_69, %c0_70, %c0_71], %339 {strides = array<i32>} : memref<2x2x32xf32, #tpu.memory_space<vmem>>, vector<1x2x32xf32>,
    %c0_72 = arith.constant 0 : index
    %c0_73 = arith.constant 0 : index
    %c0_74 = arith.constant 0 : index
    %340 = vector.load %arg11[%c0_72, %c0_73, %c0_74] : memref<2x2x32xf32, #tpu.memory_space<vmem>>, vector<1x2x32xf32>
    %341 = vector.shape_cast %340 : vector<1x2x32xf32> to vector<2x32xf32>
    %342 = vector.shape_cast %303 : vector<2x32xf32> to vector<1x2x32xf32>
    tpu.vector_store %arg11[%c0_72, %c0_73, %c0_74], %342 {strides = array<i32>} : memref<2x2x32xf32, #tpu.memory_space<vmem>>, vector<1x2x32xf32>,
    %c1_75 = arith.constant 1 : index
    %c0_76 = arith.constant 0 : index
    %c0_77 = arith.constant 0 : index
    %343 = vector.load %arg11[%c1_75, %c0_76, %c0_77] : memref<2x2x32xf32, #tpu.memory_space<vmem>>, vector<1x2x32xf32>
    %344 = vector.shape_cast %343 : vector<1x2x32xf32> to vector<2x32xf32>
    %345 = vector.shape_cast %330 : vector<2x32xf32> to vector<1x2x32xf32>
    tpu.vector_store %arg11[%c1_75, %c0_76, %c0_77], %345 {strides = array<i32>} : memref<2x2x32xf32, #tpu.memory_space<vmem>>, vector<1x2x32xf32>,
    %c0_78 = arith.constant 0 : index
    %c0_79 = arith.constant 0 : index
    %346 = vector.load %arg12[%c0_78, %c0_79] : memref<16x32xf32, #tpu.memory_space<vmem>>, vector<16x32xf32>
    %c0_80 = arith.constant 0 : index
    %c0_81 = arith.constant 0 : index
    %347 = vector.load %arg7[%c0_80, %c0_81] : memref<32x16xf32, #tpu.memory_space<vmem>>, vector<32x16xf32>
    %cst_82 = arith.constant dense<0.000000e+00> : vector<16x16xf32>
    %348 = tpu.matmul %346, %347, %cst_82 {dimension_numbers = #tpu.dot_dimension_numbers<[1], [0], [0], [1], [0, 0, 1, 1], [], []>} : vector<16x32xf32>, vector<32x16xf32>, vector<16x16xf32> -> vector<16x16xf32>
    %c0_83 = arith.constant 0 : index
    %c0_84 = arith.constant 0 : index
    %349 = vector.load %arg8[%c0_83, %c0_84] : memref<1x16xf32, #tpu.memory_space<vmem>>, vector<1x16xf32>
    %350 = vector.broadcast %349 : vector<1x16xf32> to vector<16x16xf32>
    %351 = arith.addf %348, %350 : vector<16x16xf32>
    %c0_85 = arith.constant 0 : index
    %c0_86 = arith.constant 0 : index
    %352 = vector.load %arg9[%c0_85, %c0_86] : memref<16x16xf32, #tpu.memory_space<vmem>>, vector<16x16xf32>
    tpu.vector_store %arg9[%c0_85, %c0_86], %351 {strides = array<i32>} : memref<16x16xf32, #tpu.memory_space<vmem>>, vector<16x16xf32>,
    return
  }
}

</mosaic_0001>

<bundles_post_ra>
// kernel: lstm_model_forward.1
= control target key start
LH: loop header
LB: loop body
LE: loop exit
PB: predicated region body
PF: predicated region fallthrough
CT: control target
= control target key end

     0   :  { %17 = vsyncpa [#allocation4], 0  ;;  %s2711_s0 = inlined_call_operand.vmem [shape: f32[16,16], index: 0, kind: input, shape index: {}]   ;;  %s2712_s1 = inlined_call_operand.vmem [shape: f32[2,2,32], index: 1, kind: input, shape index: {}]   ;;  %s2713_s2 = inlined_call_operand.vmem [shape: f32[2,2,32], index: 2, kind: input, shape index: {}]   ;;  %s2714_s3 = inlined_call_operand.hbm [shape: f32[16,128], index: 3, kind: input, shape index: {}]   ;;  %s2715_s4 = inlined_call_operand.vmem [shape: f32[1,128], index: 4, kind: input, shape index: {}]   ;;  %s2716_s5 = inlined_call_operand.vmem [shape: f32[96,128], index: 5, kind: input, shape index: {}]   ;;  %s2717_s6 = inlined_call_operand.vmem [shape: f32[1,128], index: 6, kind: input, shape index: {}]   ;;  %s2718_s7 = inlined_call_operand.vmem [shape: f32[32,16], index: 7, kind: input, shape index: {}]   ;;  %s2719_s8 = inlined_call_operand.hbm [shape: f32[1,16], index: 8, kind: input, shape index: {}]   ;;  %s2720_s9 = inlined_call_operand.vmem [shape: f32[16,16], index: 9, kind: output, shape index: {0}]   ;;  %s2721_s10 = inlined_call_operand.hbm [shape: f32[2,2,32], index: 10, kind: output, shape index: {1}]   ;;  %s2722_s11 = inlined_call_operand.hbm [shape: f32[2,2,32], index: 11, kind: output, shape index: {2}]  }
   0x1   :  { %18 = vsyncpa [#allocation7], 0 }
   0x2   :  { %19 = vsyncpa [#allocation5], 0 }
   0x3   :  { %20 = vsyncpa [#allocation10], 0  ;;  %s2214_s17 = smov [#allocation3]   ;;  %s2118_s21 = scalar_lea.hbm %s2714_s3, 256 }
   0x4   :  { %s32_s18 = sshll.u32 %s2214_s17, 4  ;;  %p2119_p0 = scmp.ne.s32.totalorder %s2714_s3, %s2118_s21  ;;  %s33_s18 = int_to_ptr.vmem [resolvable:$true] %s32_s18 }
   0x5   :  { %p2122_p1 = scmp.lt.u32.totalorder %s2118_s21, %s2714_s3 }
   0x7   :  { %p2124_p2 = pnand %p2122_p1, %p2119_p0 }
   0x9   :  { %2127 = shalt.err (!%p2124_p2)
}
   0xa   :  { %s2128_s26 = scalar_lea.vmem %s33_s18, 256  ;;  %p2133_p4 = scmp.lt.s32.totalorder %s33_s18, %s33_s18 }
   0xb   :  { %p2129_p3 = scmp.ne.s32.totalorder %s33_s18, %s2128_s26  ;;  %p2134_p5 = scmp.lt.s32.totalorder %s2128_s26, %s2128_s26 }
   0xd   :  { %p2135_p6 = por %p2134_p5, %p2133_p4 }
   0xf   :  { %p2136_p7 = pnand %p2135_p6, %p2129_p3 }
  0x11   :  { %2139 = shalt.err (!%p2136_p7)
}
  0x12   :  { %s2215_s27 = smov 128   ;;  %s2216_s28 = smov 8  }
  0x13   :  { %38 = dma.hbm_to_vmem [thread:$0]  %s2714_s3, 256, %s33_s18, [#allocation4], %s2215_s27, %s2215_s27, %s2216_s28  }
  0x14   :  { %s2217_s12 = smov [#allocation6]   ;;  %s2140_s16 = scalar_lea.hbm %s2719_s8, 16 }
  0x15   :  { %s53_s13 = sshll.u32 %s2217_s12, 4  ;;  %p2141_p8 = scmp.ne.s32.totalorder %s2719_s8, %s2140_s16  ;;  %s54_s13 = int_to_ptr.vmem [resolvable:$true] %s53_s13 }
  0x16   :  { %p2144_p9 = scmp.lt.u32.totalorder %s2140_s16, %s2719_s8 }
  0x18   :  { %p2146_p10 = pnand %p2144_p9, %p2141_p8 }
  0x1a   :  { %2149 = shalt.err (!%p2146_p10)
}
  0x1b   :  { %s2150_s22 = scalar_lea.vmem %s54_s13, 16  ;;  %s2154_s3 = scalar_lea.vmem %s54_s13, 32 }
  0x1c   :  { %p2151_p11 = scmp.ne.s32.totalorder %s54_s13, %s2150_s22  ;;  %p2155_p12 = scmp.lt.s32.totalorder %s54_s13, %s54_s13 }
  0x1d   :  { %p2156_p13 = scmp.lt.s32.totalorder %s2154_s3, %s2150_s22 }
  0x1f   :  { %p2157_p0 = por %p2156_p13, %p2155_p12 }
  0x21   :  { %p2158_p1 = pnand %p2157_p0, %p2151_p11 }
  0x23   :  { %2161 = shalt.err (!%p2158_p1)
}
  0x24   :  { %56 = dma.hbm_to_vmem [thread:$0]  %s2719_s8, 16, %s54_s13, [#allocation7]  }
  0x25   :  { %2206 = dma.done.wait [#allocation4], 256  }
  0x26   :  { %2207 = vsyncadd [#allocation4], 4294967040 }
  0x27   :  { %2208 = dma.done.wait [#allocation7], 16  }
  0x28   :  { %2209 = vsyncadd [#allocation7], 4294967280  ;;  %v2218_v0 = vmov 0.0|0.0   ;;  %vm2219_vm0 = vmmov 0   ;;  %v2220_v1 = vmov 0.0   ;;  %vm87_vm1 = vcmask 130048  }
  0x29   :  { %1899 = vmatprep.subr.bf16.mxu1 %v2218_v0  ;;  %1673 = vmatprep.mubr.msk.f32.mxu1 %vm2219_vm0, %v2220_v1  ;;  %v78_v2 = vld [vmem:[#allocation3] sm:$0xff]  ;;  %v79_v3 = vld [vmem:[#allocation3 + $0x8] sm:$0xff]  ;;  %v63_v4 = vld [vmem:[%s2716_s5] sm:$0xff]  ;;  %vm175_vm2 = vcmask 261120   ;;  %s2221_s20 = smov 64   ;;  %s2222_s22 = smov 32  }
  0x2a   :  { %v1895_v5 = vpack.c.bf16 %v79_v3, %v78_v2  ;;  %v64_v6 = vld [vmem:[%s2716_s5 + $0x8] sm:$0xff]  ;;  %v76_v7 = vld [vmem:[%s2711_s0] sm:$0xff]  ;;  %v65_v9 = vld [vmem:[%s2716_s5 + $0x10] sm:$0xff]  ;;  %vm284_vm3 = vcmask 523264   ;;  %vm302_vm4 = vcmask 1041408   ;;  %vm304_vm5 = vcmask 1043456  }
  0x2b   :  { %v2323_v8 = vpack.c.bf16 %v64_v6, %v63_v4  ;;  %1662 = vmatprep.mubr.msk.f32.mxu0 %vm87_vm1, %v76_v7  ;;  %v66_v10 = vld [vmem:[%s2716_s5 + $0x18] sm:$0xff]  ;;  %v77_v11 = vld [vmem:[%s2711_s0 + $0x8] sm:$0xff]  ;;  %v169_v13 = vld [vmem:[%s2712_s1] sm:$0x3]  ;;  %vm306_vm6 = vcmask 785408   ;;  %vm433_vm7 = vcmask 257026  }
  0x2c   :  { %1896 = vmatprep.subr.bf16.mxu0 %v1895_v5  ;;  %v2336_v12 = vpack.c.bf16 %v66_v10, %v65_v9  ;;  %v1507_v14 = vld [vmem:[%s2715_s4] ss:$0 sm:$0xff]  ;;  %v1510_v31 = vld [vmem:[%s2712_s1 + $0x2] sm:$0x3]  ;;  %v68_v37 = vld [vmem:[%s2716_s5 + $0x28] sm:$0xff]  ;;  %s2223_s4 = smov 96  }
  0x2d   :  { %1901 = vmatpush3.bf16.msra.mxu1 %v2323_v8  ;;  %1898 = vmatpush3.bf16.msra.mxu0 %v1895_v5  ;;  %v170_v28 = vld [vmem:[%s2713_s2] sm:$0x3]  ;;  %v69_v38 = vld [vmem:[%s2716_s5 + $0x30] sm:$0xff]  ;;  %v70_v40 = vld [vmem:[%s2716_s5 + $0x38] sm:$0xff]  ;;  %vm1358_vm8 = vcmask 254976   ;;  %s2225_s26 = smov [#allocation9]  }
  0x2e   :  { %1902 = vmatprep.subr.bf16.mxu1 %v2218_v0  ;;  %1905 = vmatprep.subr.bf16.mxu0 %v2218_v0  ;;  %v67_v36 = vld [vmem:[%s2716_s5 + $0x20] sm:$0xff]  ;;  %v2395_v41 = vpack.c.bf16 %v70_v40, %v69_v38  ;;  %v72_v43 = vld [vmem:[%s2716_s5 + $0x48] sm:$0xff]  ;;  %v73_v46 = vld [vmem:[%s2716_s5 + $0x50] sm:$0xff]  ;;  %s1488_s27 = sshll.u32 %s2225_s26, 4  ;;  %s1489_s27 = int_to_ptr.vmem [resolvable:$true] %s1488_s27 }
  0x2f   :  { %v2389_v39 = vpack.c.bf16 %v68_v37, %v67_v36  ;;  %v71_v42 = vld [vmem:[%s2716_s5 + $0x40] sm:$0xff]  ;;  %v74_v47 = vld [vmem:[%s2716_s5 + $0x58] sm:$0xff] }
  0x30   :  { %1663 = vmatmul.mubr.msk.f32.vlgmr.msra.gmra.mrb[0].mxu0 %vm87_vm1, %v77_v11  ;;  %v2408_v45 = vpack.c.bf16 %v72_v43, %v71_v42  ;;  %v2423_v48 = vpack.c.bf16 %v74_v47, %v73_v46  ;;  %v1511_v50 = vld [vmem:[%s2713_s2 + $0x2] sm:$0x3]  ;;  %v2460_v7 = vld [vmem:[%s2717_s6] ss:$0 sm:$0xff] }
  0x31   :  { %1904 = vmatpush3.bf16.msra.mxu1 %v2336_v12  ;;  %1907 = vmatpush3.bf16.msra.mxu0 %v2323_v8  ;;  %v407_v52 = vrot.slane %v1511_v50, 6 }
  0x32   :  { %1908 = vmatprep.subr.bf16.mxu0 %v2218_v0  ;;  %1700 = vmatprep.mubr.msk.f32.mxu0 %vm2219_vm0, %v2220_v1 }
  0x33   :  { %1923 = vmatprep.subr.bf16.mxu1 %v2218_v0 }
  0x34   :  { %1674 = vmatmul.mubr.msk.f32.vlgmr.msra.gmra.mrb[0].mxu1 %vm175_vm2, %v169_v13 }
  0x35   :  { %1910 = vmatpush3.bf16.msra.mxu0 %v2336_v12  ;;  %1925 = vmatpush3.bf16.msra.mxu1 %v2323_v8 }
  0x36   :  { %1911 = vmatprep.subr.bf16.mxu0 %v2218_v0  ;;  %1926 = vmatprep.subr.bf16.mxu1 %v2218_v0 }
  0x37   :  { %1727 = vmatprep.mubr.msk.f32.mxu1 %vm2219_vm0, %v2220_v1 }
  0x39   :  { %1928 = vmatpush3.bf16.msra.mxu1 %v2336_v12  ;;  %1913 = vmatpush3.bf16.msra.mxu0 %v2389_v39 }
  0x3a   :  { %1929 = vmatprep.subr.bf16.mxu1 %v2218_v0  ;;  %1914 = vmatprep.subr.bf16.mxu0 %v2218_v0 }
  0x3d   :  { %1931 = vmatpush3.bf16.msra.mxu1 %v2389_v39  ;;  %1916 = vmatpush3.bf16.msra.mxu0 %v2395_v41 }
  0x3e   :  { %1932 = vmatprep.subr.bf16.mxu1 %v2218_v0  ;;  %1917 = vmatprep.subr.bf16.mxu0 %v2218_v0 }
  0x41   :  { %1934 = vmatpush3.bf16.msra.mxu1 %v2395_v41  ;;  %1919 = vmatpush3.bf16.msra.mxu0 %v2408_v45 }
  0x42   :  { %1935 = vmatprep.subr.bf16.mxu1 %v2218_v0  ;;  %1920 = vmatprep.subr.bf16.mxu0 %v2218_v0 }
  0x45   :  { %1937 = vmatpush3.bf16.msra.mxu1 %v2408_v45  ;;  %1922 = vmatpush3.bf16.msra.mxu0 %v2423_v48 }
  0x46   :  { %1938 = vmatprep.subr.bf16.mxu1 %v2218_v0  ;;  %1941 = vmatprep.subr.bf16.mxu0 %v2218_v0 }
  0x49   :  { %1940 = vmatpush3.bf16.msra.mxu1 %v2423_v48 }
  0x4a   :  { %1959 = vmatprep.subr.bf16.mxu1 %v2218_v0 }
 0x103   :  { %v1664_v15 = vpop.f32.mrb[0].mxu0 }
 0x104   :  { %v2362_v16 = vadd.f32 %v1664_v15, %v1507_v14  ;;  %v160_v17 = vpop.f32.mrb[1].mxu0 }
 0x105   :  { %v2364_v18 = vadd.f32 %v1507_v14, %v160_v17 }
 0x107   :  { %v245_v19 = vpop.f32.mrb[0].mxu1 }
 0x108   :  { %v249_v20 = vadd.f32 %v245_v19, %v2364_v18  ;;  %v1675_v21 = vpop.f32.mrb[1].mxu1 }
 0x10a   :  { %v1513_v22 = vmul.f32 -1.442695, %v249_v20 }
 0x10c   :  { %2064 = vpow2.f32 %v1513_v22 }
 0x116   :  { %v2065_v23 = vpop.eup %2064 }
 0x117   :  { %v253_v24 = vadd.f32 1.0, %v2065_v23 }
 0x119   :  { %2066 = vrcp.f32 %v253_v24 }
 0x123   :  { %v2067_v25 = vpop.eup %2066 }
 0x124   :  { %v256_v26 = vmul.f32 2.0, %v2067_v25 }
 0x126   :  { %v1514_v27 = vadd.f32 -1.0, %v256_v26 }
 0x128   :  { %264 = vrot.lane.b32.xlu0 %v1514_v27, %s2221_s20 }
 0x12c   :  { %259 = vrot.lane.b32.xlu0 %v170_v28, %s2222_s22 }
 0x130   :  { %287 = vrot.lane.b32.xlu0 %v1510_v31, %s2222_s22 }
 0x19a   :  { %v265_v29 = vpop.permute.xlu0 %264 }
 0x19b   :  { %v267_v30 = vmul.f32 %v2067_v25, %v265_v29 }
 0x19d   :  { %269 = vrot.lane.b32.xlu1 %v267_v30, %s2222_s22 }
 0x19e   :  { %v260_v32 = vpop.permute.xlu0 %259 }
 0x19f   :  { %v262_v33 = vmul.f32 %v2067_v25, %v260_v32 }
 0x1a2   :  { %v288_v53 = vpop.permute.xlu0 %287 }
 0x1a3   :  { %v290_v54 = vsel %vm175_vm2, 0.0, %v288_v53 }
 0x1a4   :  { %v291_v55 = vsel %vm284_vm3, %v290_v54, 0.0 }
 0x1a5   :  { %v297_v58 = vrot.slane %v291_v55, 6 }
 0x20f   :  { %v270_v34 = vpop.permute.xlu1 %269 }
 0x210   :  { %v2377_v35 = vadd.f32 %v270_v34, %v262_v33 }
 0x212   :  { %2068 = vtanh.f32 %v2377_v35 }
 0x21c   :  { %v2069_v44 = vpop.eup %2068 }
 0x21d   :  { %275 = vrot.lane.b32.xlu1 %v2069_v44, %s2221_s20 }
 0x28f   :  { %v276_v49 = vpop.permute.xlu1 %275 }
 0x290   :  { %v278_v51 = vmul.f32 %v2067_v25, %v276_v49 }
 0x292   :  { %292 = vrot.lane.b32.xlu0 %v278_v51, %s2223_s4  ;;  %280 = vrot.lane.b32.xlu1 %v278_v51, %s2222_s22 }
 0x296   :  { %408 = vrot.lane.b32.xlu0 %v407_v52, %s2222_s22 }
 0x304   :  { %v281_v56 = vpop.permute.xlu1 %280  ;;  %v293_v57 = vpop.permute.xlu0 %292 }
 0x305   :  { %v283_v59 = vsel %vm175_vm2, %v281_v56, 0.0  ;;  %v295_v60 = vsel %vm284_vm3, 0.0, %v293_v57 }
 0x306   :  { %v285_v61 = vsel %vm284_vm3, %v283_v59, 0.0  ;;  %v300_v62 = vrot.slane %v295_v60, 4 }
 0x307   :  { %v303_v63 = vsel %vm302_vm4, %v285_v61, %v297_v58 }
 0x308   :  { %v305_v2 = vsel %vm304_vm5, %v303_v63, %v300_v62  ;;  %v409_v25 = vpop.permute.xlu0 %408 }
 0x309   :  { %1701 = vmatmul.mubr.msk.f32.vlgmr.msra.gmra.mrb[2].mxu0 %vm306_vm6, %v305_v2  ;;  %v411_v26 = vsel %vm302_vm4, %v2377_v35, %v409_v25 }
 0x30a   :  { %1943 = vmatpush3.bf16.msra.mxu0 %v2323_v8  ;;  %1754 = vmatprep.mubr.msk.f32.mxu0 %vm2219_vm0, %v2220_v1 }
 0x30b   :  { %1944 = vmatprep.subr.bf16.mxu0 %v2218_v0 }
 0x30e   :  { %1946 = vmatpush3.bf16.msra.mxu0 %v2336_v12 }
 0x30f   :  { %1947 = vmatprep.subr.bf16.mxu0 %v2218_v0 }
 0x312   :  { %1949 = vmatpush3.bf16.msra.mxu0 %v2389_v39 }
 0x313   :  { %1950 = vmatprep.subr.bf16.mxu0 %v2218_v0 }
 0x316   :  { %1952 = vmatpush3.bf16.msra.mxu0 %v2395_v41 }
 0x317   :  { %1953 = vmatprep.subr.bf16.mxu0 %v2218_v0 }
 0x31a   :  { %1955 = vmatpush3.bf16.msra.mxu0 %v2408_v45 }
 0x31b   :  { %1956 = vmatprep.subr.bf16.mxu0 %v2218_v0 }
 0x31e   :  { %1958 = vmatpush3.bf16.msra.mxu0 %v2423_v48 }
 0x31f   :  { %1977 = vmatprep.subr.bf16.mxu0 %v2218_v0 }
 0x3dc   :  { %v376_v3 = vpop.f32.mrb[2].mxu0 }
 0x3dd   :  { %v381_v4 = vrot.slane %v376_v3, 6  ;;  %v384_v5 = vrot.slane %v376_v3, 2  ;;  %v1702_v6 = vpop.f32.mrb[3].mxu0 }
 0x3df   :  { %v383_v9 = vadd.f32 %v381_v4, %v2364_v18  ;;  %v386_v10 = vadd.f32 %v384_v5, %v376_v3 }
 0x3e1   :  { %v393_v11 = vadd.f32 %v2460_v7, %v386_v10  ;;  %v395_v13 = vrot.slane %v383_v9, 2 }
 0x3e3   :  { %v397_v14 = vsel %vm302_vm4, %v395_v13, %v393_v11 }
 0x3e4   :  { %v1517_v15 = vmul.f32 -1.442695, %v397_v14 }
 0x3e6   :  { %2070 = vpow2.f32 %v1517_v15 }
 0x3f0   :  { %v2071_v17 = vpop.eup %2070 }
 0x3f1   :  { %v401_v19 = vadd.f32 1.0, %v2071_v17 }
 0x3f3   :  { %2072 = vrcp.f32 %v401_v19 }
 0x3fd   :  { %v2073_v20 = vpop.eup %2072 }
 0x3fe   :  { %v404_v21 = vmul.f32 2.0, %v2073_v20  ;;  %v412_v27 = vmul.f32 %v2073_v20, %v411_v26 }
 0x400   :  { %v1518_v22 = vadd.f32 -1.0, %v404_v21 }
 0x402   :  { %414 = vrot.lane.b32.xlu1 %v1518_v22, %s2221_s20 }
 0x474   :  { %v415_v23 = vpop.permute.xlu1 %414 }
 0x475   :  { %v417_v24 = vmul.f32 %v2073_v20, %v415_v23 }
 0x477   :  { %419 = vrot.lane.b32.xlu1 %v417_v24, %s2222_s22 }
 0x4e9   :  { %v420_v28 = vpop.permute.xlu1 %419 }
 0x4ea   :  { %v422_v29 = vadd.f32 %v420_v28, %v412_v27 }
 0x4ec   :  { %2074 = vtanh.f32 %v422_v29 }
 0x4f6   :  { %v2075_v30 = vpop.eup %2074 }
 0x4f7   :  { %425 = vrot.lane.b32.xlu0 %v2075_v30, %s2221_s20 }
 0x569   :  { %v426_v31 = vpop.permute.xlu0 %425 }
 0x56a   :  { %v428_v32 = vmul.f32 %v2073_v20, %v426_v31 }
 0x56c   :  { %430 = vrot.lane.b32.xlu0 %v428_v32, %s2222_s22  ;;  %v437_v33 = vrot.slane %v428_v32, 2 }
 0x56e   :  { %438 = vrot.lane.b32.xlu1 %v437_v33, %s2221_s20 }
 0x572   :  { %443 = vrot.lane.b32.xlu1 %v428_v32, %s2223_s4 }
 0x5de   :  { %v431_v34 = vpop.permute.xlu0 %430 }
 0x5df   :  { %434 = vst.msk [vmem:[#allocation2 - $0x2] sm:$0xc] %vm433_vm7, %v431_v34  ;;  %v435_v38 = vsel %vm175_vm2, %v431_v34, 0.0 }
 0x5e0   :  { %v439_v35 = vpop.permute.xlu1 %438  ;;  %v436_v44 = vsel %vm284_vm3, %v435_v38, 0.0 }
 0x5e1   :  { %v441_v36 = vsel %vm175_vm2, 0.0, %v439_v35 }
 0x5e2   :  { %v442_v37 = vsel %vm284_vm3, %v441_v36, 0.0 }
 0x5e3   :  { %v448_v40 = vrot.slane %v442_v37, 6 }
 0x5e4   :  { %v444_v42 = vpop.permute.xlu1 %443 }
 0x5e5   :  { %v446_v43 = vsel %vm284_vm3, 0.0, %v444_v42  ;;  %v453_v47 = vsel %vm302_vm4, %v436_v44, %v448_v40 }
 0x5e6   :  { %v451_v46 = vrot.slane %v446_v43, 4 }
 0x5e8   :  { %v454_v49 = vsel %vm304_vm5, %v453_v47, %v451_v46 }
 0x5e9   :  { %1728 = vmatmul.mubr.msk.f32.vlgmr.msra.gmra.mrb[2].mxu1 %vm306_vm6, %v454_v49 }
 0x5ea   :  { %1961 = vmatpush3.bf16.msra.mxu1 %v2323_v8  ;;  %1781 = vmatprep.mubr.msk.f32.mxu1 %vm2219_vm0, %v2220_v1 }
 0x5eb   :  { %1962 = vmatprep.subr.bf16.mxu1 %v2218_v0 }
 0x5ee   :  { %1964 = vmatpush3.bf16.msra.mxu1 %v2336_v12 }
 0x5ef   :  { %1965 = vmatprep.subr.bf16.mxu1 %v2218_v0 }
 0x5f2   :  { %1967 = vmatpush3.bf16.msra.mxu1 %v2389_v39 }
 0x5f3   :  { %1968 = vmatprep.subr.bf16.mxu1 %v2218_v0 }
 0x5f6   :  { %1970 = vmatpush3.bf16.msra.mxu1 %v2395_v41 }
 0x5f7   :  { %1971 = vmatprep.subr.bf16.mxu1 %v2218_v0 }
 0x5fa   :  { %1973 = vmatpush3.bf16.msra.mxu1 %v2408_v45 }
 0x5fb   :  { %1974 = vmatprep.subr.bf16.mxu1 %v2218_v0 }
 0x5fe   :  { %1976 = vmatpush3.bf16.msra.mxu1 %v2423_v48 }
 0x5ff   :  { %1995 = vmatprep.subr.bf16.mxu1 %v2218_v0 }
 0x6bc   :  { %v524_v50 = vpop.f32.mrb[2].mxu1 }
 0x6bd   :  { %v529_v51 = vrot.slane %v524_v50, 4  ;;  %v532_v52 = vrot.slane %v524_v50, 2  ;;  %v1729_v53 = vpop.f32.mrb[3].mxu1 }
 0x6bf   :  { %v531_v54 = vadd.f32 %v529_v51, %v2364_v18  ;;  %v534_v55 = vadd.f32 %v532_v52, %v524_v50 }
 0x6c1   :  { %v535_v56 = vadd.f32 %v2460_v7, %v534_v55  ;;  %v537_v57 = vrot.slane %v531_v54, 4 }
 0x6c3   :  { %v539_v58 = vsel %vm302_vm4, %v537_v57, %v535_v56 }
 0x6c4   :  { %v1520_v59 = vmul.f32 -1.442695, %v539_v58 }
 0x6c6   :  { %2076 = vpow2.f32 %v1520_v59 }
 0x6d0   :  { %v2077_v60 = vpop.eup %2076 }
 0x6d1   :  { %v543_v61 = vadd.f32 1.0, %v2077_v60 }
 0x6d3   :  { %2078 = vrcp.f32 %v543_v61 }
 0x6dd   :  { %v2079_v62 = vpop.eup %2078 }
 0x6de   :  { %v546_v63 = vmul.f32 2.0, %v2079_v62  ;;  %v548_v5 = vmul.f32 %v2079_v62, %v422_v29 }
 0x6e0   :  { %v1521_v2 = vadd.f32 -1.0, %v546_v63 }
 0x6e2   :  { %550 = vrot.lane.b32.xlu0 %v1521_v2, %s2221_s20 }
 0x754   :  { %v551_v3 = vpop.permute.xlu0 %550 }
 0x755   :  { %v553_v4 = vmul.f32 %v2079_v62, %v551_v3 }
 0x757   :  { %555 = vrot.lane.b32.xlu1 %v553_v4, %s2222_s22 }
 0x7c9   :  { %v556_v6 = vpop.permute.xlu1 %555 }
 0x7ca   :  { %v558_v9 = vadd.f32 %v556_v6, %v548_v5 }
 0x7cc   :  { %2080 = vtanh.f32 %v558_v9 }
 0x7d6   :  { %v2081_v10 = vpop.eup %2080 }
 0x7d7   :  { %561 = vrot.lane.b32.xlu0 %v2081_v10, %s2221_s20 }
 0x849   :  { %v562_v11 = vpop.permute.xlu0 %561 }
 0x84a   :  { %v564_v13 = vmul.f32 %v2079_v62, %v562_v11 }
 0x84c   :  { %566 = vrot.lane.b32.xlu0 %v564_v13, %s2222_s22  ;;  %v572_v14 = vrot.slane %v564_v13, 2 }
 0x84e   :  { %573 = vrot.lane.b32.xlu1 %v572_v14, %s2221_s20 }
 0x852   :  { %578 = vrot.lane.b32.xlu1 %v564_v13, %s2223_s4 }
 0x8be   :  { %v567_v15 = vpop.permute.xlu0 %566 }
 0x8bf   :  { %569 = vst.msk [vmem:[#allocation2] sm:$0xc] %vm433_vm7, %v567_v15  ;;  %v570_v21 = vsel %vm175_vm2, %v567_v15, 0.0 }
 0x8c0   :  { %v574_v17 = vpop.permute.xlu1 %573  ;;  %v571_v25 = vsel %vm284_vm3, %v570_v21, 0.0 }
 0x8c1   :  { %v576_v19 = vsel %vm175_vm2, 0.0, %v574_v17 }
 0x8c2   :  { %v577_v20 = vsel %vm284_vm3, %v576_v19, 0.0 }
 0x8c3   :  { %v583_v22 = vrot.slane %v577_v20, 6 }
 0x8c4   :  { %v579_v23 = vpop.permute.xlu1 %578 }
 0x8c5   :  { %v581_v24 = vsel %vm284_vm3, 0.0, %v579_v23  ;;  %v588_v27 = vsel %vm302_vm4, %v571_v25, %v583_v22 }
 0x8c6   :  { %v586_v26 = vrot.slane %v581_v24, 4 }
 0x8c8   :  { %v589_v28 = vsel %vm304_vm5, %v588_v27, %v586_v26 }
 0x8c9   :  { %1755 = vmatmul.mubr.msk.f32.vlgmr.msra.gmra.mrb[4].mxu0 %vm306_vm6, %v589_v28 }
 0x8ca   :  { %1979 = vmatpush3.bf16.msra.mxu0 %v2323_v8  ;;  %1808 = vmatprep.mubr.msk.f32.mxu0 %vm2219_vm0, %v2220_v1 }
 0x8cb   :  { %1980 = vmatprep.subr.bf16.mxu0 %v2218_v0 }
 0x8ce   :  { %1982 = vmatpush3.bf16.msra.mxu0 %v2336_v12 }
 0x8cf   :  { %1983 = vmatprep.subr.bf16.mxu0 %v2218_v0 }
 0x8d2   :  { %1985 = vmatpush3.bf16.msra.mxu0 %v2389_v39 }
 0x8d3   :  { %1986 = vmatprep.subr.bf16.mxu0 %v2218_v0 }
 0x8d6   :  { %1988 = vmatpush3.bf16.msra.mxu0 %v2395_v41 }
 0x8d7   :  { %1989 = vmatprep.subr.bf16.mxu0 %v2218_v0 }
 0x8da   :  { %1991 = vmatpush3.bf16.msra.mxu0 %v2408_v45 }
 0x8db   :  { %1992 = vmatprep.subr.bf16.mxu0 %v2218_v0 }
 0x8de   :  { %1994 = vmatpush3.bf16.msra.mxu0 %v2423_v48 }
 0x8df   :  { %2013 = vmatprep.subr.bf16.mxu0 %v2218_v0 }
 0x99c   :  { %v659_v29 = vpop.f32.mrb[4].mxu0 }
 0x99d   :  { %v664_v30 = vrot.slane %v659_v29, 2  ;;  %v1756_v31 = vpop.f32.mrb[5].mxu0 }
 0x99f   :  { %v666_v32 = vadd.f32 %v664_v30, %v2364_v18  ;;  %v667_v33 = vadd.f32 %v664_v30, %v659_v29 }
 0x9a1   :  { %v668_v34 = vadd.f32 %v2460_v7, %v667_v33  ;;  %v670_v35 = vrot.slane %v666_v32, 6 }
 0x9a3   :  { %v672_v36 = vsel %vm302_vm4, %v670_v35, %v668_v34 }
 0x9a4   :  { %v1523_v37 = vmul.f32 -1.442695, %v672_v36 }
 0x9a6   :  { %2082 = vpow2.f32 %v1523_v37 }
 0x9b0   :  { %v2083_v38 = vpop.eup %2082 }
 0x9b1   :  { %v676_v40 = vadd.f32 1.0, %v2083_v38 }
 0x9b3   :  { %2084 = vrcp.f32 %v676_v40 }
 0x9bd   :  { %v2085_v42 = vpop.eup %2084 }
 0x9be   :  { %v679_v43 = vmul.f32 2.0, %v2085_v42  ;;  %v681_v18 = vmul.f32 %v2085_v42, %v558_v9 }
 0x9c0   :  { %v1524_v44 = vadd.f32 -1.0, %v679_v43 }
 0x9c2   :  { %683 = vrot.lane.b32.xlu0 %v1524_v44, %s2221_s20 }
 0xa34   :  { %v684_v46 = vpop.permute.xlu0 %683 }
 0xa35   :  { %v686_v47 = vmul.f32 %v2085_v42, %v684_v46 }
 0xa37   :  { %688 = vrot.lane.b32.xlu1 %v686_v47, %s2222_s22 }
 0xaa9   :  { %v689_v49 = vpop.permute.xlu1 %688 }
 0xaaa   :  { %v691_v50 = vadd.f32 %v689_v49, %v681_v18 }
 0xaac   :  { %2086 = vtanh.f32 %v691_v50 }
 0xab6   :  { %v2087_v51 = vpop.eup %2086 }
 0xab7   :  { %694 = vrot.lane.b32.xlu0 %v2087_v51, %s2221_s20 }
 0xb29   :  { %v695_v52 = vpop.permute.xlu0 %694 }
 0xb2a   :  { %v697_v53 = vmul.f32 %v2085_v42, %v695_v52 }
 0xb2c   :  { %699 = vrot.lane.b32.xlu0 %v697_v53, %s2222_s22  ;;  %v705_v54 = vrot.slane %v697_v53, 2 }
 0xb2e   :  { %706 = vrot.lane.b32.xlu1 %v705_v54, %s2221_s20 }
 0xb32   :  { %711 = vrot.lane.b32.xlu1 %v697_v53, %s2223_s4 }
 0xb9e   :  { %v700_v55 = vpop.permute.xlu0 %699 }
 0xb9f   :  { %702 = vst.msk [vmem:[#allocation2 + $0x2] sm:$0xc] %vm433_vm7, %v700_v55  ;;  %v703_v59 = vsel %vm175_vm2, %v700_v55, 0.0 }
 0xba0   :  { %v707_v56 = vpop.permute.xlu1 %706  ;;  %v704_v63 = vsel %vm284_vm3, %v703_v59, 0.0 }
 0xba1   :  { %v709_v57 = vsel %vm175_vm2, 0.0, %v707_v56 }
 0xba2   :  { %v710_v58 = vsel %vm284_vm3, %v709_v57, 0.0 }
 0xba3   :  { %v716_v60 = vrot.slane %v710_v58, 6 }
 0xba4   :  { %v712_v61 = vpop.permute.xlu1 %711 }
 0xba5   :  { %v714_v62 = vsel %vm284_vm3, 0.0, %v712_v61  ;;  %v721_v3 = vsel %vm302_vm4, %v704_v63, %v716_v60 }
 0xba6   :  { %v719_v2 = vrot.slane %v714_v62, 4 }
 0xba8   :  { %v722_v4 = vsel %vm304_vm5, %v721_v3, %v719_v2 }
 0xba9   :  { %1782 = vmatmul.mubr.msk.f32.vlgmr.msra.gmra.mrb[4].mxu1 %vm306_vm6, %v722_v4 }
 0xbaa   :  { %1997 = vmatpush3.bf16.msra.mxu1 %v2323_v8  ;;  %1835 = vmatprep.mubr.msk.f32.mxu1 %vm2219_vm0, %v2220_v1 }
 0xbab   :  { %1998 = vmatprep.subr.bf16.mxu1 %v2218_v0 }
 0xbae   :  { %2000 = vmatpush3.bf16.msra.mxu1 %v2336_v12 }
 0xbaf   :  { %2001 = vmatprep.subr.bf16.mxu1 %v2218_v0 }
 0xbb2   :  { %2003 = vmatpush3.bf16.msra.mxu1 %v2389_v39 }
 0xbb3   :  { %2004 = vmatprep.subr.bf16.mxu1 %v2218_v0 }
 0xbb6   :  { %2006 = vmatpush3.bf16.msra.mxu1 %v2395_v41 }
 0xbb7   :  { %2007 = vmatprep.subr.bf16.mxu1 %v2218_v0 }
 0xbba   :  { %2009 = vmatpush3.bf16.msra.mxu1 %v2408_v45 }
 0xbbb   :  { %2010 = vmatprep.subr.bf16.mxu1 %v2218_v0 }
 0xbbe   :  { %2012 = vmatpush3.bf16.msra.mxu1 %v2423_v48 }
 0xbbf   :  { %2031 = vmatprep.subr.bf16.mxu1 %v2218_v0 }
 0xc7c   :  { %v792_v5 = vpop.f32.mrb[4].mxu1 }
 0xc7d   :  { %v798_v6 = vrot.slane %v792_v5, 2  ;;  %v1783_v9 = vpop.f32.mrb[5].mxu1  ;;  %v796_v11 = vadd.f32 %v792_v5, %v2362_v16 }
 0xc7f   :  { %v800_v10 = vadd.f32 %v798_v6, %v792_v5 }
 0xc81   :  { %v801_v13 = vadd.f32 %v2460_v7, %v800_v10 }
 0xc83   :  { %v802_v14 = vsel %vm302_vm4, %v796_v11, %v801_v13 }
 0xc84   :  { %v1526_v15 = vmul.f32 -1.442695, %v802_v14 }
 0xc86   :  { %2088 = vpow2.f32 %v1526_v15 }
 0xc90   :  { %v2089_v17 = vpop.eup %2088 }
 0xc91   :  { %v806_v19 = vadd.f32 1.0, %v2089_v17 }
 0xc93   :  { %2090 = vrcp.f32 %v806_v19 }
 0xc9d   :  { %v2091_v20 = vpop.eup %2090 }
 0xc9e   :  { %v809_v21 = vmul.f32 2.0, %v2091_v20  ;;  %v811_v25 = vmul.f32 %v2091_v20, %v691_v50 }
 0xca0   :  { %v1527_v22 = vadd.f32 -1.0, %v809_v21 }
 0xca2   :  { %813 = vrot.lane.b32.xlu0 %v1527_v22, %s2221_s20 }
 0xd14   :  { %v814_v23 = vpop.permute.xlu0 %813 }
 0xd15   :  { %v816_v24 = vmul.f32 %v2091_v20, %v814_v23 }
 0xd17   :  { %818 = vrot.lane.b32.xlu1 %v816_v24, %s2222_s22 }
 0xd89   :  { %v819_v26 = vpop.permute.xlu1 %818 }
 0xd8a   :  { %v821_v27 = vadd.f32 %v819_v26, %v811_v25 }
 0xd8c   :  { %2092 = vtanh.f32 %v821_v27 }
 0xd96   :  { %v2093_v28 = vpop.eup %2092 }
 0xd97   :  { %824 = vrot.lane.b32.xlu0 %v2093_v28, %s2221_s20 }
 0xe09   :  { %v825_v29 = vpop.permute.xlu0 %824 }
 0xe0a   :  { %v827_v30 = vmul.f32 %v2091_v20, %v825_v29 }
 0xe0c   :  { %829 = vrot.lane.b32.xlu0 %v827_v30, %s2222_s22  ;;  %v835_v31 = vrot.slane %v827_v30, 2 }
 0xe0e   :  { %836 = vrot.lane.b32.xlu1 %v835_v31, %s2221_s20 }
 0xe12   :  { %841 = vrot.lane.b32.xlu1 %v827_v30, %s2223_s4 }
 0xe7e   :  { %v830_v32 = vpop.permute.xlu0 %829 }
 0xe7f   :  { %832 = vst.msk [vmem:[#allocation2 + $0x4] sm:$0xc] %vm433_vm7, %v830_v32  ;;  %v833_v36 = vsel %vm175_vm2, %v830_v32, 0.0 }
 0xe80   :  { %v837_v33 = vpop.permute.xlu1 %836  ;;  %v834_v42 = vsel %vm284_vm3, %v833_v36, 0.0 }
 0xe81   :  { %v839_v34 = vsel %vm175_vm2, 0.0, %v837_v33 }
 0xe82   :  { %v840_v35 = vsel %vm284_vm3, %v839_v34, 0.0 }
 0xe83   :  { %v846_v37 = vrot.slane %v840_v35, 6 }
 0xe84   :  { %v842_v38 = vpop.permute.xlu1 %841 }
 0xe85   :  { %v844_v40 = vsel %vm284_vm3, 0.0, %v842_v38  ;;  %v851_v44 = vsel %vm302_vm4, %v834_v42, %v846_v37 }
 0xe86   :  { %v849_v43 = vrot.slane %v844_v40, 4 }
 0xe88   :  { %v852_v46 = vsel %vm304_vm5, %v851_v44, %v849_v43 }
 0xe89   :  { %1809 = vmatmul.mubr.msk.f32.vlgmr.msra.gmra.mrb[6].mxu0 %vm306_vm6, %v852_v46 }
 0xe8a   :  { %2015 = vmatpush3.bf16.msra.mxu0 %v2323_v8  ;;  %1862 = vmatprep.mubr.msk.f32.mxu0 %vm2219_vm0, %v2220_v1 }
 0xe8b   :  { %2016 = vmatprep.subr.bf16.mxu0 %v2218_v0 }
 0xe8e   :  { %2018 = vmatpush3.bf16.msra.mxu0 %v2336_v12 }
 0xe8f   :  { %2019 = vmatprep.subr.bf16.mxu0 %v2218_v0 }
 0xe92   :  { %2021 = vmatpush3.bf16.msra.mxu0 %v2389_v39 }
 0xe93   :  { %2022 = vmatprep.subr.bf16.mxu0 %v2218_v0 }
 0xe96   :  { %2024 = vmatpush3.bf16.msra.mxu0 %v2395_v41 }
 0xe97   :  { %2025 = vmatprep.subr.bf16.mxu0 %v2218_v0 }
 0xe9a   :  { %2027 = vmatpush3.bf16.msra.mxu0 %v2408_v45 }
 0xe9b   :  { %2028 = vmatprep.subr.bf16.mxu0 %v2218_v0 }
 0xe9e   :  { %2030 = vmatpush3.bf16.msra.mxu0 %v2423_v48 }
 0xf5c   :  { %v922_v8 = vpop.f32.mrb[6].mxu0 }
 0xf5d   :  { %v927_v47 = vrot.slane %v922_v8, 6  ;;  %v930_v18 = vrot.slane %v922_v8, 2  ;;  %v1810_v12 = vpop.f32.mrb[7].mxu0 }
 0xf5f   :  { %v929_v49 = vadd.f32 %v927_v47, %v2362_v16  ;;  %v932_v50 = vadd.f32 %v930_v18, %v922_v8 }
 0xf61   :  { %v933_v51 = vadd.f32 %v2460_v7, %v932_v50  ;;  %v935_v52 = vrot.slane %v929_v49, 2 }
 0xf63   :  { %v937_v53 = vsel %vm302_vm4, %v935_v52, %v933_v51 }
 0xf64   :  { %v1529_v54 = vmul.f32 -1.442695, %v937_v53 }
 0xf66   :  { %2094 = vpow2.f32 %v1529_v54 }
 0xf70   :  { %v2095_v55 = vpop.eup %2094 }
 0xf71   :  { %v941_v56 = vadd.f32 1.0, %v2095_v55 }
 0xf73   :  { %2096 = vrcp.f32 %v941_v56 }
 0xf7d   :  { %v2097_v57 = vpop.eup %2096 }
 0xf7e   :  { %v944_v58 = vmul.f32 2.0, %v2097_v57  ;;  %v946_v62 = vmul.f32 %v2097_v57, %v821_v27 }
 0xf80   :  { %v1530_v59 = vadd.f32 -1.0, %v944_v58 }
 0xf82   :  { %948 = vrot.lane.b32.xlu0 %v1530_v59, %s2221_s20 }
 0xff4   :  { %v949_v60 = vpop.permute.xlu0 %948 }
 0xff5   :  { %v951_v61 = vmul.f32 %v2097_v57, %v949_v60 }
 0xff7   :  { %953 = vrot.lane.b32.xlu1 %v951_v61, %s2222_s22 }
0x1069   :  { %v954_v63 = vpop.permute.xlu1 %953 }
0x106a   :  { %v956_v2 = vadd.f32 %v954_v63, %v946_v62 }
0x106c   :  { %2098 = vtanh.f32 %v956_v2 }
0x1076   :  { %v2099_v3 = vpop.eup %2098 }
0x1077   :  { %959 = vrot.lane.b32.xlu0 %v2099_v3, %s2221_s20 }
0x10e9   :  { %v960_v4 = vpop.permute.xlu0 %959 }
0x10ea   :  { %v962_v5 = vmul.f32 %v2097_v57, %v960_v4 }
0x10ec   :  { %964 = vrot.lane.b32.xlu0 %v962_v5, %s2222_s22  ;;  %v970_v6 = vrot.slane %v962_v5, 2 }
0x10ee   :  { %971 = vrot.lane.b32.xlu1 %v970_v6, %s2221_s20 }
0x10f2   :  { %976 = vrot.lane.b32.xlu1 %v962_v5, %s2223_s4 }
0x115e   :  { %v965_v9 = vpop.permute.xlu0 %964 }
0x115f   :  { %967 = vst.msk [vmem:[#allocation2 + $0x6] sm:$0xc] %vm433_vm7, %v965_v9  ;;  %v968_v14 = vsel %vm175_vm2, %v965_v9, 0.0 }
0x1160   :  { %v972_v10 = vpop.permute.xlu1 %971  ;;  %v969_v20 = vsel %vm284_vm3, %v968_v14, 0.0 }
0x1161   :  { %v974_v11 = vsel %vm175_vm2, 0.0, %v972_v10 }
0x1162   :  { %v975_v13 = vsel %vm284_vm3, %v974_v11, 0.0 }
0x1163   :  { %v981_v15 = vrot.slane %v975_v13, 6 }
0x1164   :  { %v977_v17 = vpop.permute.xlu1 %976 }
0x1165   :  { %v979_v19 = vsel %vm284_vm3, 0.0, %v977_v17  ;;  %v986_v22 = vsel %vm302_vm4, %v969_v20, %v981_v15 }
0x1166   :  { %v984_v21 = vrot.slane %v979_v19, 4 }
0x1168   :  { %v987_v23 = vsel %vm304_vm5, %v986_v22, %v984_v21 }
0x1169   :  { %1836 = vmatmul.mubr.msk.f32.vlgmr.msra.gmra.mrb[6].mxu1 %vm306_vm6, %v987_v23 }
0x116a   :  { %2033 = vmatpush3.bf16.msra.mxu1 %v2389_v39  ;;  %1881 = vmatprep.mubr.msk.f32.mxu1 %vm2219_vm0, %v2220_v1 }
0x116b   :  { %2034 = vmatprep.subr.bf16.mxu1 %v2218_v0 }
0x116e   :  { %2036 = vmatpush3.bf16.msra.mxu1 %v2395_v41 }
0x116f   :  { %2037 = vmatprep.subr.bf16.mxu1 %v2218_v0 }
0x1172   :  { %2039 = vmatpush3.bf16.msra.mxu1 %v2408_v45 }
0x1173   :  { %2040 = vmatprep.subr.bf16.mxu1 %v2218_v0 }
0x1176   :  { %2042 = vmatpush3.bf16.msra.mxu1 %v2423_v48 }
0x123c   :  { %v1057_v24 = vpop.f32.mrb[6].mxu1 }
0x123d   :  { %v1062_v25 = vrot.slane %v1057_v24, 4  ;;  %v1065_v26 = vrot.slane %v1057_v24, 2  ;;  %v1837_v27 = vpop.f32.mrb[7].mxu1 }
0x123f   :  { %v1064_v39 = vadd.f32 %v1062_v25, %v2362_v16  ;;  %v1067_v28 = vadd.f32 %v1065_v26, %v1057_v24  ;;  %v1373_v26 = vld [vmem:[#allocation2] sm:$0xff] }
0x1241   :  { %v1068_v1 = vadd.f32 %v2460_v7, %v1067_v28  ;;  %v1070_v29 = vrot.slane %v1064_v39, 4 }
0x1243   :  { %v1072_v41 = vsel %vm302_vm4, %v1070_v29, %v1068_v1 }
0x1244   :  { %v1532_v30 = vmul.f32 -1.442695, %v1072_v41 }
0x1246   :  { %2100 = vpow2.f32 %v1532_v30 }
0x1250   :  { %v2101_v31 = vpop.eup %2100 }
0x1251   :  { %v1076_v45 = vadd.f32 1.0, %v2101_v31 }
0x1253   :  { %2102 = vrcp.f32 %v1076_v45 }
0x125d   :  { %v2103_v0 = vpop.eup %2102 }
0x125e   :  { %v1079_v32 = vmul.f32 2.0, %v2103_v0  ;;  %v1081_v35 = vmul.f32 %v2103_v0, %v956_v2 }
0x1260   :  { %v1533_v48 = vadd.f32 -1.0, %v1079_v32 }
0x1262   :  { %1083 = vrot.lane.b32.xlu0 %v1533_v48, %s2221_s20 }
0x12d4   :  { %v1084_v33 = vpop.permute.xlu0 %1083 }
0x12d5   :  { %v1086_v34 = vmul.f32 %v2103_v0, %v1084_v33 }
0x12d7   :  { %1088 = vrot.lane.b32.xlu1 %v1086_v34, %s2222_s22 }
0x1349   :  { %v1089_v36 = vpop.permute.xlu1 %1088 }
0x134a   :  { %v1091_v37 = vadd.f32 %v1089_v36, %v1081_v35 }
0x134c   :  { %2104 = vtanh.f32 %v1091_v37 }
0x1356   :  { %v2105_v38 = vpop.eup %2104 }
0x1357   :  { %1094 = vrot.lane.b32.xlu0 %v2105_v38, %s2221_s20  ;;  %v1375_v38 = vld [vmem:[%s2718_s7] sm:$0xff] }
0x13c9   :  { %v1095_v40 = vpop.permute.xlu0 %1094 }
0x13ca   :  { %v1097_v42 = vmul.f32 %v2103_v0, %v1095_v40  ;;  %v1376_v40 = vld [vmem:[%s2718_s7 + $0x8] sm:$0xff] }
0x13cc   :  { %1099 = vrot.lane.b32.xlu0 %v1097_v42, %s2222_s22  ;;  %v1105_v43 = vrot.slane %v1097_v42, 2 }
0x13ce   :  { %1106 = vrot.lane.b32.xlu1 %v1105_v43, %s2221_s20  ;;  %v1377_v43 = vld [vmem:[%s2718_s7 + $0x10] sm:$0xff] }
0x13d2   :  { %1111 = vrot.lane.b32.xlu1 %v1097_v42, %s2223_s4  ;;  %v2043_v42 = vpack.c.bf16 %v1376_v40, %v1375_v38 }
0x13d4   :  { %2044 = vmatprep.subr.bf16.mxu1 %v2043_v42 }
0x143e   :  { %v1100_v44 = vpop.permute.xlu0 %1099 }
0x143f   :  { %1102 = vst.msk [vmem:[#allocation2 + $0x8] sm:$0xc] %vm433_vm7, %v1100_v44  ;;  %v1103_v18 = vsel %vm175_vm2, %v1100_v44, 0.0  ;;  %v1378_v44 = vld [vmem:[%s2718_s7 + $0x18] sm:$0xff]  ;;  %s2224_s7 = smov [#allocation8]  }
0x1440   :  { %v1107_v46 = vpop.permute.xlu1 %1106  ;;  %v1104_v51 = vsel %vm284_vm3, %v1103_v18, 0.0 }
0x1441   :  { %v1109_v8 = vsel %vm175_vm2, 0.0, %v1107_v46  ;;  %v2047_v46 = vpack.c.bf16 %v1378_v44, %v1377_v43 }
0x1442   :  { %v1110_v47 = vsel %vm284_vm3, %v1109_v8, 0.0 }
0x1443   :  { %v1116_v12 = vrot.slane %v1110_v47, 6 }
0x1444   :  { %v1112_v49 = vpop.permute.xlu1 %1111 }
0x1445   :  { %v1114_v50 = vsel %vm284_vm3, 0.0, %v1112_v49  ;;  %v1121_v53 = vsel %vm302_vm4, %v1104_v51, %v1116_v12 }
0x1446   :  { %v1119_v52 = vrot.slane %v1114_v50, 4 }
0x1448   :  { %v1122_v54 = vsel %vm304_vm5, %v1121_v53, %v1119_v52 }
0x1449   :  { %1863 = vmatmul.mubr.msk.f32.vlgmr.msra.gmra.mrb[8].mxu0 %vm306_vm6, %v1122_v54 }
0x151c   :  { %v1192_v55 = vpop.f32.mrb[8].mxu0 }
0x151d   :  { %v1197_v56 = vrot.slane %v1192_v55, 2  ;;  %v1864_v57 = vpop.f32.mrb[9].mxu0 }
0x151f   :  { %v1199_v58 = vadd.f32 %v1197_v56, %v2362_v16  ;;  %v1200_v59 = vadd.f32 %v1197_v56, %v1192_v55 }
0x1521   :  { %v1201_v60 = vadd.f32 %v2460_v7, %v1200_v59  ;;  %v1203_v61 = vrot.slane %v1199_v58, 6 }
0x1523   :  { %v1205_v62 = vsel %vm302_vm4, %v1203_v61, %v1201_v60 }
0x1524   :  { %v1535_v63 = vmul.f32 -1.442695, %v1205_v62 }
0x1526   :  { %2106 = vpow2.f32 %v1535_v63 }
0x1530   :  { %v2107_v2 = vpop.eup %2106 }
0x1531   :  { %v1209_v3 = vadd.f32 1.0, %v2107_v2 }
0x1533   :  { %2108 = vrcp.f32 %v1209_v3 }
0x153d   :  { %v2109_v4 = vpop.eup %2108 }
0x153e   :  { %v1212_v5 = vmul.f32 2.0, %v2109_v4  ;;  %v1214_v16 = vmul.f32 %v2109_v4, %v1091_v37 }
0x1540   :  { %v1536_v6 = vadd.f32 -1.0, %v1212_v5 }
0x1542   :  { %1216 = vrot.lane.b32.xlu0 %v1536_v6, %s2221_s20 }
0x15b4   :  { %v1217_v9 = vpop.permute.xlu0 %1216 }
0x15b5   :  { %v1219_v10 = vmul.f32 %v2109_v4, %v1217_v9 }
0x15b7   :  { %1221 = vrot.lane.b32.xlu1 %v1219_v10, %s2222_s22 }
0x1629   :  { %v1222_v11 = vpop.permute.xlu1 %1221 }
0x162a   :  { %v1224_v13 = vadd.f32 %v1222_v11, %v1214_v16 }
0x162c   :  { %2110 = vtanh.f32 %v1224_v13  ;;  %v1335_v34 = vrot.slane %v1224_v13, 2 }
0x1636   :  { %v2111_v14 = vpop.eup %2110 }
0x1637   :  { %1227 = vrot.lane.b32.xlu0 %v2111_v14, %s2221_s20 }
0x16a9   :  { %v1228_v15 = vpop.permute.xlu0 %1227 }
0x16aa   :  { %v1230_v17 = vmul.f32 %v2109_v4, %v1228_v15 }
0x16ac   :  { %1237 = vrot.lane.b32.xlu0 %v1230_v17, %s2221_s20  ;;  %1232 = vrot.lane.b32.xlu1 %v1230_v17, %s2222_s22 }
0x171e   :  { %v1238_v19 = vpop.permute.xlu0 %1237  ;;  %v1233_v20 = vpop.permute.xlu1 %1232 }
0x171f   :  { %v1240_v21 = vsel %vm175_vm2, 0.0, %v1238_v19  ;;  %1235 = vst.msk [vmem:[#allocation2 + $0xa] sm:$0xc] %vm433_vm7, %v1233_v20  ;;  %v1236_v22 = vsel %vm175_vm2, %v1233_v20, 0.0 }
0x1720   :  { %1360 = vst.msk [vmem:[#allocation8] sm:$0x3] %vm1358_vm8, %v1233_v20  ;;  %v1245_v23 = vrot.slane %v1240_v21, 6  ;;  %v1242_v24 = vrot.slane %v1236_v22, 2 }
0x1722   :  { %v1247_v25 = vsel %vm302_vm4, %v1242_v24, %v1245_v23 }
0x1723   :  { %1882 = vmatmul.mubr.msk.f32.vlgmr.msra.gmra.mrb[8].mxu1 %vm284_vm3, %v1247_v25 }
0x1724   :  { %1892 = vmatprep.mubr.msk.f32.mxu1 %vm175_vm2, %v1373_v26  ;;  %2046 = vmatpush3.bf16.msra.mxu1 %v2043_v42 }
0x1725   :  { %2048 = vmatprep.subr.bf16.mxu1 %v2047_v46 }
0x1728   :  { %2050 = vmatpush3.bf16.msra.mxu1 %v2047_v46 }
0x17f6   :  { %v1317_v27 = vpop.f32.mrb[8].mxu1 }
0x17f7   :  { %v1322_v39 = vrot.slane %v1317_v27, 2  ;;  %v1883_v28 = vpop.f32.mrb[9].mxu1 }
0x17f9   :  { %v1324_v1 = vadd.f32 %v1322_v39, %v1317_v27 }
0x17fb   :  { %v1325_v29 = vadd.f32 %v2460_v7, %v1324_v1 }
0x17fd   :  { %v1538_v41 = vmul.f32 -1.442695, %v1325_v29 }
0x17ff   :  { %2112 = vpow2.f32 %v1538_v41 }
0x1809   :  { %v2113_v30 = vpop.eup %2112 }
0x180a   :  { %v1329_v31 = vadd.f32 1.0, %v2113_v30 }
0x180c   :  { %2114 = vrcp.f32 %v1329_v31 }
0x1816   :  { %v2115_v45 = vpop.eup %2114 }
0x1817   :  { %v1332_v0 = vmul.f32 2.0, %v2115_v45  ;;  %v1337_v35 = vmul.f32 %v2115_v45, %v1335_v34 }
0x1819   :  { %v1539_v32 = vadd.f32 -1.0, %v1332_v0 }
0x181b   :  { %1339 = vrot.lane.b32.xlu1 %v1539_v32, %s2221_s20 }
0x188d   :  { %v1340_v48 = vpop.permute.xlu1 %1339 }
0x188e   :  { %v1342_v33 = vmul.f32 %v2115_v45, %v1340_v48 }
0x1890   :  { %1344 = vrot.lane.b32.xlu0 %v1342_v33, %s2222_s22 }
0x1902   :  { %v1345_v36 = vpop.permute.xlu0 %1344 }
0x1903   :  { %v1347_v37 = vadd.f32 %v1345_v36, %v1337_v35 }
0x1905   :  { %2116 = vtanh.f32 %v1347_v37 }
0x190f   :  { %v2117_v7 = vpop.eup %2116 }
0x1910   :  { %1350 = vrot.lane.b32.xlu1 %v2117_v7, %s2221_s20  ;;  %s1476_s20 = sshll.u32 %s2224_s7, 4  ;;  %s1477_s20 = int_to_ptr.vmem [resolvable:$true] %s1476_s20 }
0x1911   :  { %s2162_s1 = scalar_lea.vmem %s1477_s20, 64  ;;  %p2167_p3 = scmp.lt.s32.totalorder %s1477_s20, %s1477_s20 }
0x1912   :  { %p2163_p2 = scmp.ne.s32.totalorder %s1477_s20, %s2162_s1  ;;  %p2168_p4 = scmp.lt.s32.totalorder %s2162_s1, %s2162_s1 }
0x1914   :  { %1363 = vrot.lane.b32.xlu1 %v1224_v13, %s2223_s4  ;;  %p2169_p5 = por %p2168_p4, %p2167_p3 }
0x1916   :  { %p2170_p6 = pnand %p2169_p5, %p2163_p2 }
0x1982   :  { %v1351_v8 = vpop.permute.xlu1 %1350 }
0x1983   :  { %v1353_v47 = vmul.f32 %v2115_v45, %v1351_v8 }
0x1985   :  { %1355 = vrot.lane.b32.xlu0 %v1353_v47, %s2222_s22 }
0x1986   :  { %v1364_v18 = vpop.permute.xlu1 %1363 }
0x1987   :  { %1366 = vst.msk [vmem:[#allocation9] sm:$0x3] %vm1358_vm8, %v1364_v18 }
0x1989   :  { %1368 = vrot.lane.b32.xlu0 %v1347_v37, %s2223_s4 }
0x19f7   :  { %v1356_v12 = vpop.permute.xlu0 %1355 }
0x19f8   :  { %1359 = vst.msk [vmem:[#allocation2 + $0xe] sm:$0x3] %vm1358_vm8, %v1356_v12  ;;  %1362 = vst.msk [vmem:[#allocation8 + $0x2] sm:$0x3] %vm1358_vm8, %v1356_v12 }
0x19fb   :  { %v1369_v49 = vpop.permute.xlu0 %1368 }
0x19fc   :  { %1372 = vst.msk [vmem:[#allocation9 + $0x2] sm:$0x3] %vm1358_vm8, %v1369_v49 }
0x19ff   :  { %v1374_v50 = vld [vmem:[#allocation2 + $0x8] sm:$0xff] }
0x1a00   :  { %1893 = vmatmul.mubr.msk.f32.vlgmr.msra.gmra.mrb[10].mxu1 %vm175_vm2, %v1374_v50 }
0x1a01   :  { %2173 = shalt.err (!%p2170_p6)
}
0x1a02   :  { %s2174_s30 = scalar_lea.hbm %s2721_s10, 64 }
0x1a03   :  { %p2175_p7 = scmp.ne.s32.totalorder %s2721_s10, %s2174_s30  ;;  %p2178_p8 = scmp.lt.u32.totalorder %s2174_s30, %s2721_s10 }
0x1a05   :  { %p2180_p9 = pnand %p2178_p8, %p2175_p7 }
0x1a07   :  { %2183 = shalt.err (!%p2180_p9)
}
0x1a08   :  { %s2226_s16 = smov 2   ;;  %s2184_s19 = scalar_lea.vmem %s1489_s27, 64 }
0x1a09   :  { %1482 = dma.vmem_to_hbm [thread:$0]  %s1477_s20, 64, %s2721_s10, [#allocation5], %s2222_s22, %s2222_s22, %s2226_s16  }
0x1a0a   :  { %p2185_p10 = scmp.ne.s32.totalorder %s1489_s27, %s2184_s19  ;;  %p2189_p11 = scmp.lt.s32.totalorder %s1489_s27, %s1489_s27 }
0x1a0b   :  { %p2190_p12 = scmp.lt.s32.totalorder %s2184_s19, %s2184_s19 }
0x1a0d   :  { %p2191_p13 = por %p2190_p12, %p2189_p11 }
0x1a0f   :  { %p2192_p0 = pnand %p2191_p13, %p2185_p10 }
0x1a11   :  { %2195 = shalt.err (!%p2192_p0)
}
0x1a12   :  { %s2196_s5 = scalar_lea.hbm %s2722_s11, 64 }
0x1a13   :  { %p2197_p1 = scmp.ne.s32.totalorder %s2722_s11, %s2196_s5  ;;  %p2200_p2 = scmp.lt.u32.totalorder %s2196_s5, %s2722_s11 }
0x1a15   :  { %p2202_p3 = pnand %p2200_p2, %p2197_p1 }
0x1a17   :  { %2205 = shalt.err (!%p2202_p3)
}
0x1a18   :  { %1494 = dma.vmem_to_hbm [thread:$0]  %s1489_s27, 64, %s2722_s11, [#allocation10], %s2222_s22, %s2222_s22, %s2226_s16   ;;  %v1540_v51 = vld [vmem:[#allocation6] ss:$0 sm:$0xff] }
0x1ad3   :  { %v1894_v52 = vpop.f32.mrb[10].mxu1 }
0x1ad4   :  { %v1464_v53 = vadd.f32 %v1894_v52, %v1540_v51  ;;  %v1458_v54 = vpop.f32.mrb[11].mxu1 }
0x1ad5   :  { %v1459_v55 = vadd.f32 %v1540_v51, %v1458_v54 }
0x1ad6   :  { %1468 = vst.msk [vmem:[%s2720_s9 + $0x8] sm:$0xff] %vm87_vm1, %v1464_v53 }
0x1ad7   :  { %1467 = vst.msk [vmem:[%s2720_s9] sm:$0xff] %vm87_vm1, %v1459_v55 }
0x1ad8   :  { %2210 = dma.done.wait [#allocation5], 64  }
0x1ad9   :  { %2211 = vsyncadd [#allocation5], 4294967232 }
0x1ada   :  { %2212 = dma.done.wait [#allocation10], 64  }
0x1adb   :  { %2213 = vsyncadd [#allocation10], 4294967232 }
0x1adc   :  { %1503 = vsyncpa [#allocation4], 1 }
0x1add   :  { %1504 = vsyncpa [#allocation7], 1 }
0x1ade   :  { %1505 = vsyncpa [#allocation5], 1 }
0x1adf   :  { %1506 = vsyncpa [#allocation10], 1 }

</bundles_post_ra>
